<compile_context>
chip_gen: v6e
topology: v6e:2x2x1
jax: 0.10.0
libtpu: 0.0.40
codegen_flags: <defaults>
</compile_context>

<pallas_src>
import numpy as np
import jax
import jax.numpy as jnp
from jax.experimental import pallas as pl
from jax.experimental.pallas import tpu as pltpu


def _round_up(x, m):
    return (x + m - 1) // m * m


def _pad2(x, rows, cols):
    r, c = x.shape
    return jnp.pad(x, ((0, rows - r), (0, cols - c)))


def nnconv_kernel(x_ref, w3_ref, adj_ref, inv_deg_ref, resbias_ref, out_ref):
    k = pl.program_id(0)

    @pl.when(k == 0)
    def _init():
        out_ref[...] = jnp.zeros_like(out_ref)

    # Fused edge Linear + per-edge h_src weighting + edge bias, one MXU contraction:
    #   msg[e, o] = sum_{f,d} efeat[e,f]*hsrc[e,d]*W_edge[f, d*D_OUT+o]
    #             + sum_d    hsrc[e,d]*b_edge[d*D_OUT+o]
    msg = jnp.dot(x_ref[...], w3_ref[...], preferred_element_type=jnp.float32)

    # Sum-aggregation of this edge tile into the full-N resident f32 accumulator (= out_ref).
    # adj is exact 0/1 (mean normalization applied in the f32 epilogue).
    out_ref[...] += jnp.dot(adj_ref[...], msg.astype(adj_ref.dtype),
                            preferred_element_type=jnp.float32)

    @pl.when(k == pl.num_programs(0) - 1)
    def _finalize():
        # mean normalization (exact f32 1/deg) + precomputed residual projection + bias.
        out_ref[...] = out_ref[...] * inv_deg_ref[...] + resbias_ref[...]


def nnconv(efeat, w_edge, b_edge, feat, src, dst, w_res, bias,
           *, e_tile=512, mxu_dtype=jnp.bfloat16):
    N, D_IN = feat.shape
    E, F_E = efeat.shape
    D_OUT = w_res.shape[1]

    # ---------- JAX glue: gather, exact 0/1 adjacency, per-edge outer product ----------
    hsrc = jnp.take(feat, src, axis=0)                                       # (E, D_IN)
    one_hot = (dst[:, None] == jnp.arange(N)[None, :]).astype(jnp.float32)   # (E, N)
    deg = one_hot.sum(axis=0)
    inv_deg = jnp.where(deg > 0, 1.0 / jnp.maximum(deg, 1.0), 0.0)           # f32, epilogue only
    adj = one_hot.T                                                          # (N, E) exact 0/1

    # X[e, f*D_IN+d] = efeat[e,f]*hsrc[e,d]; append hsrc so the edge-Linear bias folds into
    # the same contraction:  msg = [efeat (x) hsrc | hsrc] @ [W3 ; B_edge].
    x = (efeat[:, :, None] * hsrc[:, None, :]).reshape(E, F_E * D_IN)
    x_aug = jnp.concatenate([x, hsrc], axis=1)                               # (E, K), K=(F_E+1)*D_IN
    w3 = jnp.concatenate([w_edge.reshape(F_E * D_IN, D_OUT),
                          b_edge.reshape(D_IN, D_OUT)], axis=0)              # (K, D_OUT)

    # Residual projection + bias precomputed once by XLA (tiny matmul), added in f32 epilogue.
    res_bias = feat @ w_res + bias[None, :]                                  # (N, D_OUT)

    # ---------- padding: lane-dense output, sublane-aligned N, tile-aligned E; K NOT padded ----------
    K = x_aug.shape[1]                                                       # 144 here (multiple of 8)
    D_OUT_P = _round_up(D_OUT, 128)
    N_P = _round_up(N, 8)
    e_tile = min(e_tile, _round_up(E, 128))
    E_P = _round_up(E, e_tile)

    x_p = _pad2(x_aug, E_P, K).astype(mxu_dtype)                             # K kept at 144 in HBM
    w3_p = _pad2(w3, K, D_OUT_P).astype(mxu_dtype)
    adj_p = _pad2(adj, N_P, E_P).astype(mxu_dtype)                           # 0/1: exact even in bf16
    inv_deg_p = _pad2(inv_deg.reshape(N, 1), N_P, 1).astype(jnp.float32)
    resbias_p = _pad2(res_bias, N_P, D_OUT_P).astype(jnp.float32)

    grid = (E_P // e_tile,)

    out_p = pl.pallas_call(
        nnconv_kernel,
        out_shape=jax.ShapeDtypeStruct((N_P, D_OUT_P), jnp.float32),
        grid_spec=pltpu.PrefetchScalarGridSpec(
            num_scalar_prefetch=0,
            grid=grid,
            in_specs=[
                pl.BlockSpec((e_tile, K), lambda k: (k, 0)),        # fused edge operand (streamed once)
                pl.BlockSpec((K, D_OUT_P), lambda k: (0, 0)),       # fused edge weight (resident)
                pl.BlockSpec((N_P, e_tile), lambda k: (0, k)),      # 0/1 adjacency tile
                pl.BlockSpec((N_P, 1), lambda k: (0, 0)),           # inv-degree column (resident, f32)
                pl.BlockSpec((N_P, D_OUT_P), lambda k: (0, 0)),     # residual + bias (resident, f32)
            ],
            out_specs=pl.BlockSpec((N_P, D_OUT_P), lambda k: (0, 0)),  # resident f32 accumulator
        ),
        compiler_params=pltpu.CompilerParams(
            dimension_semantics=("arbitrary",),                     # single reduction axis
        ),
    )(x_p, w3_p, adj_p, inv_deg_p, resbias_p)

    return out_p[:N, :D_OUT]


def nnconv_ref(efeat, w_edge, b_edge, feat, src, dst, w_res, bias):
    # Pure-JAX reference replicating the DGL/PyTorch forward exactly.
    E, _ = efeat.shape
    N, D_IN = feat.shape
    D_OUT = w_res.shape[1]
    w3 = (efeat @ w_edge + b_edge).reshape(E, D_IN, D_OUT)
    hsrc = feat[src]
    m = hsrc[:, :, None] * w3
    one_hot = (dst[:, None] == jnp.arange(N)[None, :]).astype(jnp.float32)
    deg = one_hot.sum(axis=0)
    inv_deg = jnp.where(deg > 0, 1.0 / jnp.maximum(deg, 1.0), 0.0)
    neigh = jnp.einsum('en,eio->nio', one_hot, m) * inv_deg[:, None, None]
    rst = neigh.sum(axis=1)
    return rst + feat @ w_res + bias


if __name__ == "__main__":
    N, E, F_E, D_IN, D_OUT = 64, 1024, 8, 16, 8

    key = jax.random.PRNGKey(0)
    k1, k2, k3, k4, k5, k6, k7 = jax.random.split(key, 7)

    feat = jax.random.normal(k1, (N, D_IN), jnp.float32)
    efeat = jax.random.normal(k2, (E, F_E), jnp.float32)
    src = jax.random.randint(k3, (E,), 0, N)
    dst = jax.random.randint(k4, (E,), 0, N)

    # edge_func = Linear(F_E, D_IN*D_OUT): Glorot-uniform weight, small uniform bias.
    lim = float(np.sqrt(6.0 / (F_E + D_IN * D_OUT)))
    w_edge = jax.random.uniform(k5, (F_E, D_IN * D_OUT), jnp.float32, -lim, lim)
    blim = float(1.0 / np.sqrt(F_E))
    b_edge = jax.random.uniform(k7, (D_IN * D_OUT,), jnp.float32, -blim, blim)

    # residual res_fc = Linear(D_IN, D_OUT, bias=False): xavier_normal with relu gain.
    gain = float(np.sqrt(2.0))
    std = gain * float(np.sqrt(2.0 / (D_IN + D_OUT)))
    w_res = std * jax.random.normal(k6, (D_IN, D_OUT), jnp.float32)

    # NNConv bias initialized to zeros (per reset_parameters).
    bias = jnp.zeros((D_OUT,), jnp.float32)

    ref = nnconv_ref(efeat, w_edge, b_edge, feat, src, dst, w_res, bias)

    # Strict f32-operand path (accuracy check).
    out_f32 = nnconv(efeat, w_edge, b_edge, feat, src, dst, w_res, bias,
                     mxu_dtype=jnp.float32)
    jax.block_until_ready(out_f32)
    assert out_f32.shape == (N, D_OUT)
    assert jnp.allclose(out_f32, ref, atol=1e-3, rtol=1e-3), "f32 mismatch vs reference"

    # Default bf16-MXU-operand path (all generations): 0/1 adjacency is exact in bf16,
    # 1/deg + residual + bias stay f32, so only x/w3/msg quantization remains.
    out_bf16 = nnconv(efeat, w_edge, b_edge, feat, src, dst, w_res, bias)
    jax.block_until_ready(out_bf16)
    assert out_bf16.shape == (N, D_OUT)
    assert jnp.allclose(out_bf16, ref, atol=5e-2, rtol=5e-2), "bf16 mismatch vs reference"

    print("KERNEL_OK")
</pallas_src>

<mosaic_0001>
module attributes {stable_mosaic.version = 11 : i64} {
  func.func @nnconv_kernel(%arg0: i32, %arg1: memref<512x144xf32, #tpu.memory_space<vmem>>, %arg2: memref<144x128xf32, #tpu.memory_space<vmem>>, %arg3: memref<64x512xf32, #tpu.memory_space<vmem>>, %arg4: memref<64x1xf32, #tpu.memory_space<vmem>>, %arg5: memref<64x128xf32, #tpu.memory_space<vmem>>, %arg6: memref<64x128xf32, #tpu.memory_space<vmem>>) attributes {dimension_semantics = [#tpu.dimension_semantics<arbitrary>], iteration_bounds = array<i64: 2>, scalar_prefetch = 0 : i64, scratch_operands = 0 : i64, tpu.core_type = #tpu.core_type<tc>, window_params = [{transform_indices = @transform_0, window_bounds = array<i64: 512, 144>}, {pipeline_mode = #tpu.pipeline_mode<synchronous>, transform_indices = @transform_1, window_bounds = array<i64: 144, 128>}, {transform_indices = @transform_2, window_bounds = array<i64: 64, 512>}, {pipeline_mode = #tpu.pipeline_mode<synchronous>, transform_indices = @transform_3, window_bounds = array<i64: 64, 1>}, {pipeline_mode = #tpu.pipeline_mode<synchronous>, transform_indices = @transform_4, window_bounds = array<i64: 64, 128>}, {pipeline_mode = #tpu.pipeline_mode<synchronous>, transform_indices = @transform_5, window_bounds = array<i64: 64, 128>}]} {
    %c0_i32 = arith.constant 0 : i32
    %0 = arith.cmpi eq, %arg0, %c0_i32 : i32
    %1 = arith.extui %0 : i1 to i32
    %c0_i32_0 = arith.constant 0 : i32
    %2 = arith.cmpi ne, %1, %c0_i32_0 : i32
    scf.if %2 {
      %cst_12 = arith.constant 0.000000e+00 : f32
      %14 = vector.broadcast %cst_12 : f32 to vector<64x128xf32>
      %c0_13 = arith.constant 0 : index
      %c0_14 = arith.constant 0 : index
      %15 = vector.load %arg6[%c0_13, %c0_14] : memref<64x128xf32, #tpu.memory_space<vmem>>, vector<64x128xf32>
      tpu.vector_store %arg6[%c0_13, %c0_14], %14 {strides = array<i32>} : memref<64x128xf32, #tpu.memory_space<vmem>>, vector<64x128xf32>,
    } else {
    }
    %c0 = arith.constant 0 : index
    %c0_1 = arith.constant 0 : index
    %3 = vector.load %arg1[%c0, %c0_1] : memref<512x144xf32, #tpu.memory_space<vmem>>, vector<512x144xf32>
    %c0_2 = arith.constant 0 : index
    %c0_3 = arith.constant 0 : index
    %4 = vector.load %arg2[%c0_2, %c0_3] : memref<144x128xf32, #tpu.memory_space<vmem>>, vector<144x128xf32>
    %cst = arith.constant dense<0.000000e+00> : vector<512x128xf32>
    %5 = tpu.matmul %3, %4, %cst {dimension_numbers = #tpu.dot_dimension_numbers<[1], [0], [0], [1], [0, 0, 1, 1], [], []>} : vector<512x144xf32>, vector<144x128xf32>, vector<512x128xf32> -> vector<512x128xf32>
    %c0_4 = arith.constant 0 : index
    %c0_5 = arith.constant 0 : index
    %6 = vector.load %arg6[%c0_4, %c0_5] : memref<64x128xf32, #tpu.memory_space<vmem>>, vector<64x128xf32>
    %c0_6 = arith.constant 0 : index
    %c0_7 = arith.constant 0 : index
    %7 = vector.load %arg3[%c0_6, %c0_7] : memref<64x512xf32, #tpu.memory_space<vmem>>, vector<64x512xf32>
    %cst_8 = arith.constant dense<0.000000e+00> : vector<64x128xf32>
    %8 = tpu.matmul %7, %5, %cst_8 {dimension_numbers = #tpu.dot_dimension_numbers<[1], [0], [0], [1], [0, 0, 1, 1], [], []>} : vector<64x512xf32>, vector<512x128xf32>, vector<64x128xf32> -> vector<64x128xf32>
    %9 = arith.addf %6, %8 : vector<64x128xf32>
    %c0_9 = arith.constant 0 : index
    %c0_10 = arith.constant 0 : index
    %10 = vector.load %arg6[%c0_9, %c0_10] : memref<64x128xf32, #tpu.memory_space<vmem>>, vector<64x128xf32>
    tpu.vector_store %arg6[%c0_9, %c0_10], %9 {strides = array<i32>} : memref<64x128xf32, #tpu.memory_space<vmem>>, vector<64x128xf32>,
    %c1_i32 = arith.constant 1 : i32
    %11 = arith.cmpi eq, %arg0, %c1_i32 : i32
    %12 = arith.extui %11 : i1 to i32
    %c0_i32_11 = arith.constant 0 : i32
    %13 = arith.cmpi ne, %12, %c0_i32_11 : i32
    scf.if %13 {
      %c0_12 = arith.constant 0 : index
      %c0_13 = arith.constant 0 : index
      %14 = vector.load %arg6[%c0_12, %c0_13] : memref<64x128xf32, #tpu.memory_space<vmem>>, vector<64x128xf32>
      %c0_14 = arith.constant 0 : index
      %c0_15 = arith.constant 0 : index
      %15 = vector.load %arg4[%c0_14, %c0_15] : memref<64x1xf32, #tpu.memory_space<vmem>>, vector<64x1xf32>
      %16 = vector.broadcast %15 : vector<64x1xf32> to vector<64x128xf32>
      %17 = arith.mulf %14, %16 : vector<64x128xf32>
      %c0_16 = arith.constant 0 : index
      %c0_17 = arith.constant 0 : index
      %18 = vector.load %arg5[%c0_16, %c0_17] : memref<64x128xf32, #tpu.memory_space<vmem>>, vector<64x128xf32>
      %19 = arith.addf %17, %18 : vector<64x128xf32>
      %c0_18 = arith.constant 0 : index
      %c0_19 = arith.constant 0 : index
      %20 = vector.load %arg6[%c0_18, %c0_19] : memref<64x128xf32, #tpu.memory_space<vmem>>, vector<64x128xf32>
      tpu.vector_store %arg6[%c0_18, %c0_19], %19 {strides = array<i32>} : memref<64x128xf32, #tpu.memory_space<vmem>>, vector<64x128xf32>,
    } else {
    }
    return
  }
  func.func @transform_0(%arg0: i32) -> (i32, i32) {
    %c0_i32 = arith.constant 0 : i32
    %c0_i32_0 = arith.constant 0 : i32
    return %arg0, %c0_i32 : i32, i32
  }
  func.func @transform_1(%arg0: i32) -> (i32, i32) {
    %c0_i32 = arith.constant 0 : i32
    %c0_i32_0 = arith.constant 0 : i32
    %c0_i32_1 = arith.constant 0 : i32
    return %c0_i32, %c0_i32_0 : i32, i32
  }
  func.func @transform_2(%arg0: i32) -> (i32, i32) {
    %c0_i32 = arith.constant 0 : i32
    %c0_i32_0 = arith.constant 0 : i32
    return %c0_i32, %arg0 : i32, i32
  }
  func.func @transform_3(%arg0: i32) -> (i32, i32) {
    %c0_i32 = arith.constant 0 : i32
    %c0_i32_0 = arith.constant 0 : i32
    %c0_i32_1 = arith.constant 0 : i32
    return %c0_i32, %c0_i32_0 : i32, i32
  }
  func.func @transform_4(%arg0: i32) -> (i32, i32) {
    %c0_i32 = arith.constant 0 : i32
    %c0_i32_0 = arith.constant 0 : i32
    %c0_i32_1 = arith.constant 0 : i32
    return %c0_i32, %c0_i32_0 : i32, i32
  }
  func.func @transform_5(%arg0: i32) -> (i32, i32) {
    %c0_i32 = arith.constant 0 : i32
    %c0_i32_0 = arith.constant 0 : i32
    %c0_i32_1 = arith.constant 0 : i32
    return %c0_i32, %c0_i32_0 : i32, i32
  }
}

</mosaic_0001>

<bundles_post_ra>
// kernel: tpu_custom_call.1
= control target key start
LH: loop header
LB: loop body
LE: loop exit
PB: predicated region body
PF: predicated region fallthrough
CT: control target
= control target key end

     0   :  { %10 = vsyncpa [#allocation4], 0  ;;  %s1836_s18 = smov 0   ;;  %s1838_s19 = smov 0   ;;  %s2481_s0 = inlined_call_operand.vmem [shape: f32[1024,144], index: 0, kind: input, shape index: {}]   ;;  %s2482_s1 = inlined_call_operand.vmem [shape: f32[144,128], index: 1, kind: input, shape index: {}]   ;;  %s2483_s2 = inlined_call_operand.vmem [shape: f32[64,1024], index: 2, kind: input, shape index: {}]   ;;  %s2484_s3 = inlined_call_operand.vmem [shape: f32[64,1], index: 3, kind: input, shape index: {}]   ;;  %s2485_s4 = inlined_call_operand.vmem [shape: f32[64,128], index: 4, kind: input, shape index: {}]   ;;  %s2486_s5 = inlined_call_operand.hbm [shape: f32[64,128], index: 5, kind: output, shape index: {}]  }
   0x1   :  { %s1840_s20 = smov 0  }
   0x2 LB: > { %s1852_s21 = sadd.s32 4294967295, %s1798_s20   ;;  %s1855_s22 = sadd.s32 1, %s1798_s20   ;;  %s1798_s20 = sphi %s1840_s20, %s2493_s20   ;;  %s1794_s19 = sphi %s1838_s19, %s2492_s19   ;;  %s1790_s18 = sphi %s1836_s18, %s2491_s18  }
   0x3   : > { %s67_s23 = ssub.s32 %s1798_s20, %s1855_s22  ;;  %s70_s24 = sadd.s32 1, %s1794_s19 }
   0x4   : > { %p68_p0 = scmp.eq.s32.totalorder %s67_s23, 0  ;;  %p77_p1 = scmp.ne.s32.totalorder %s1794_s19, %s1790_s18 }
   0x5   : > { %p78_p2 = scmp.eq.s32.totalorder %s1798_s20, 0  ;;  %p1481_p4 = scmp.ge.s32.totalorder %s1798_s20, 2 }
   0x6   : > { %s1864_s25 = scalar_select %p68_p0, %s1794_s19, %s70_s24  }
   0x7   : > { %p79_p3 = por %p78_p2, %p77_p1  ;;  %175 = sbr.rel (%p1481_p4) target bundleno = 32 (0x20), region = 28 }
   0xc   : > { %188 = sbr.rel (!%p79_p3) target bundleno = 32 (0x20), region = 36  ;;  %s190_s26 = sand.u32 (%p79_p3), 1, %s1794_s19  }
   0xd   : > { %s1560_s27 = sshll.u32 (%p79_p3), %s1798_s20, 5  ;;  %s1482_s28 = sshll.u32 (%p79_p3), %s190_s26, 8 }
   0xe   : > { %s1872_s6 = scalar_lea.vmem (%p79_p3), %s2483_s2, %s1560_s27  ;;  %s1877_s7 = scalar_lea.vmem (%p79_p3), [#allocation2], %s1482_s28 }
   0xf   : > { %v208_v0 = vld [vmem:[%s1872_s6] sm:$0xff] (%p79_p3)  ;;  %v210_v1 = vld [vmem:[%s1872_s6 + $0x8] sm:$0xff] (%p79_p3)  ;;  %v212_v2 = vld [vmem:[%s1872_s6 + $0x10] sm:$0xff] (%p79_p3) }
  0x10   : > { %209 = vst [vmem:[%s1877_s7] sm:$0xff] (%p79_p3), %v208_v0  ;;  %211 = vst [vmem:[%s1877_s7 + $0x8] sm:$0xff] (%p79_p3), %v210_v1  ;;  %v214_v3 = vld [vmem:[%s1872_s6 + $0x18] sm:$0xff] (%p79_p3)  ;;  %v216_v4 = vld [vmem:[%s1872_s6 + $0x40] sm:$0xff] (%p79_p3) }
  0x11   : > { %213 = vst [vmem:[%s1877_s7 + $0x10] sm:$0xff] %v212_v2  ;;  %v218_v5 = vld [vmem:[%s1872_s6 + $0x48] sm:$0xff]  ;;  %215 = vst [vmem:[%s1877_s7 + $0x18] sm:$0xff] %v214_v3  ;;  %v220_v6 = vld [vmem:[%s1872_s6 + $0x50] sm:$0xff] }
  0x12   : > { %217 = vst [vmem:[%s1877_s7 + $0x20] sm:$0xff] %v216_v4  ;;  %219 = vst [vmem:[%s1877_s7 + $0x28] sm:$0xff] %v218_v5  ;;  %v222_v7 = vld [vmem:[%s1872_s6 + $0x58] sm:$0xff]  ;;  %v224_v8 = vld [vmem:[%s1872_s6 + $0x80] sm:$0xff] }
  0x13   : > { %221 = vst [vmem:[%s1877_s7 + $0x30] sm:$0xff] %v220_v6  ;;  %223 = vst [vmem:[%s1877_s7 + $0x38] sm:$0xff] %v222_v7  ;;  %v226_v9 = vld [vmem:[%s1872_s6 + $0x88] sm:$0xff]  ;;  %v228_v10 = vld [vmem:[%s1872_s6 + $0x90] sm:$0xff] }
  0x14   : > { %225 = vst [vmem:[%s1877_s7 + $0x40] sm:$0xff] %v224_v8  ;;  %v230_v11 = vld [vmem:[%s1872_s6 + $0x98] sm:$0xff]  ;;  %227 = vst [vmem:[%s1877_s7 + $0x48] sm:$0xff] %v226_v9  ;;  %v232_v12 = vld [vmem:[%s1872_s6 + $0xc0] sm:$0xff] }
  0x15   : > { %229 = vst [vmem:[%s1877_s7 + $0x50] sm:$0xff] %v228_v10  ;;  %231 = vst [vmem:[%s1877_s7 + $0x58] sm:$0xff] %v230_v11  ;;  %v234_v13 = vld [vmem:[%s1872_s6 + $0xc8] sm:$0xff]  ;;  %v236_v14 = vld [vmem:[%s1872_s6 + $0xd0] sm:$0xff] }
  0x16   : > { %233 = vst [vmem:[%s1877_s7 + $0x60] sm:$0xff] %v232_v12  ;;  %235 = vst [vmem:[%s1877_s7 + $0x68] sm:$0xff] %v234_v13  ;;  %v238_v15 = vld [vmem:[%s1872_s6 + $0xd8] sm:$0xff]  ;;  %v240_v16 = vld [vmem:[%s1872_s6 + $0x100] sm:$0xff] }
  0x17   : > { %237 = vst [vmem:[%s1877_s7 + $0x70] sm:$0xff] %v236_v14  ;;  %v242_v17 = vld [vmem:[%s1872_s6 + $0x108] sm:$0xff]  ;;  %239 = vst [vmem:[%s1877_s7 + $0x78] sm:$0xff] %v238_v15  ;;  %v244_v18 = vld [vmem:[%s1872_s6 + $0x110] sm:$0xff] }
  0x18   : > { %241 = vst [vmem:[%s1877_s7 + $0x80] sm:$0xff] %v240_v16  ;;  %243 = vst [vmem:[%s1877_s7 + $0x88] sm:$0xff] %v242_v17  ;;  %v246_v19 = vld [vmem:[%s1872_s6 + $0x118] sm:$0xff]  ;;  %v248_v20 = vld [vmem:[%s1872_s6 + $0x140] sm:$0xff] }
  0x19   : > { %245 = vst [vmem:[%s1877_s7 + $0x90] sm:$0xff] %v244_v18  ;;  %247 = vst [vmem:[%s1877_s7 + $0x98] sm:$0xff] %v246_v19  ;;  %v250_v21 = vld [vmem:[%s1872_s6 + $0x148] sm:$0xff]  ;;  %v252_v22 = vld [vmem:[%s1872_s6 + $0x150] sm:$0xff] }
  0x1a   : > { %249 = vst [vmem:[%s1877_s7 + $0xa0] sm:$0xff] %v248_v20  ;;  %v254_v23 = vld [vmem:[%s1872_s6 + $0x158] sm:$0xff]  ;;  %251 = vst [vmem:[%s1877_s7 + $0xa8] sm:$0xff] %v250_v21  ;;  %v256_v24 = vld [vmem:[%s1872_s6 + $0x180] sm:$0xff] }
  0x1b   : > { %253 = vst [vmem:[%s1877_s7 + $0xb0] sm:$0xff] %v252_v22  ;;  %255 = vst [vmem:[%s1877_s7 + $0xb8] sm:$0xff] %v254_v23  ;;  %v258_v25 = vld [vmem:[%s1872_s6 + $0x188] sm:$0xff]  ;;  %v260_v26 = vld [vmem:[%s1872_s6 + $0x190] sm:$0xff] }
  0x1c   : > { %257 = vst [vmem:[%s1877_s7 + $0xc0] sm:$0xff] %v256_v24  ;;  %259 = vst [vmem:[%s1877_s7 + $0xc8] sm:$0xff] %v258_v25  ;;  %v262_v27 = vld [vmem:[%s1872_s6 + $0x198] sm:$0xff]  ;;  %v264_v28 = vld [vmem:[%s1872_s6 + $0x1c0] sm:$0xff] }
  0x1d   : > { %261 = vst [vmem:[%s1877_s7 + $0xd0] sm:$0xff] %v260_v26  ;;  %v266_v29 = vld [vmem:[%s1872_s6 + $0x1c8] sm:$0xff]  ;;  %263 = vst [vmem:[%s1877_s7 + $0xd8] sm:$0xff] %v262_v27  ;;  %v268_v30 = vld [vmem:[%s1872_s6 + $0x1d0] sm:$0xff] }
  0x1e   : > { %265 = vst [vmem:[%s1877_s7 + $0xe0] sm:$0xff] %v264_v28  ;;  %267 = vst [vmem:[%s1877_s7 + $0xe8] sm:$0xff] %v266_v29  ;;  %v270_v31 = vld [vmem:[%s1872_s6 + $0x1d8] sm:$0xff] }
  0x1f   : > { %269 = vst [vmem:[%s1877_s7 + $0xf0] sm:$0xff] %v268_v30  ;;  %271 = vst [vmem:[%s1877_s7 + $0xf8] sm:$0xff] %v270_v31 }
  0x20 PF: > { %p1485_p5 = scmp.ge.s32.totalorder %s1798_s20, 1  ;;  %p276_p6 = scmp.lt.s32.totalorder %s1798_s20, 3 }
  0x22   : > { %p277_p7 = pnand %p1485_p5, %p276_p6 }
  0x24   : > { %280 = sbr.rel (%p277_p7) target bundleno = 862 (0x35e), region = 59 }
  0x29   : > { %s283_s8 = sand.u32 1, %s1790_s18   ;;  %s1487_s9 = sshll.u32 %s1852_s21, 6 }
  0x2a   : > { %s1486_s10 = sshll.u32 %s283_s8, 8  ;;  %p312_p8 = scmp.lt.s32.totalorder %s1487_s9, 127 }
  0x2b   : > { %s1949_s15 = scalar_lea.vmem [#allocation2], %s1486_s10  ;;  %p1490_p9 = scmp.ne.s32.totalorder %s1852_s21, 0 }
  0x2c   : > { %s2495_s9 = smov (!%p312_p8, %s1487_s9), 127 }
  0x2d   : > { %s1561_s11 = sshll.u32 %s2495_s9, 4  ;;  %322 = sbr.rel (%p1490_p9) target bundleno = 55 (0x37), region = 67 }
  0x2e   : > { %s1947_s14 = scalar_lea.vmem %s2481_s0, %s1561_s11 }
  0x32   : > { %v1800_v32 = vmov 0.0  }
  0x33   : > { %323 = vst [vmem:[#allocation3] sm:$0xff] %v1800_v32  ;;  %324 = vst [vmem:[#allocation3 + $0x8] sm:$0xff] %v1800_v32 }
  0x34   : > { %325 = vst [vmem:[#allocation3 + $0x10] sm:$0xff] %v1800_v32  ;;  %326 = vst [vmem:[#allocation3 + $0x18] sm:$0xff] %v1800_v32 }
  0x35   : > { %327 = vst [vmem:[#allocation3 + $0x20] sm:$0xff] %v1800_v32  ;;  %328 = vst [vmem:[#allocation3 + $0x28] sm:$0xff] %v1800_v32 }
  0x36   : > { %329 = vst [vmem:[#allocation3 + $0x30] sm:$0xff] %v1800_v32  ;;  %330 = vst [vmem:[#allocation3 + $0x38] sm:$0xff] %v1800_v32 }
  0x37 PF: > { %v474_v33 = vld [vmem:[%s2482_s1 + $0x78] sm:$0xff]  ;;  %v1801_v34 = vmov 0.0   ;;  %v473_v35 = vld [vmem:[%s2482_s1 + $0x70] sm:$0xff]  ;;  %v472_v36 = vld [vmem:[%s2482_s1 + $0x68] sm:$0xff]  ;;  %vm477_vm0 = vcmask 130048   ;;  %p1555_p10 = scmp.ne.s32.totalorder %s1852_s21, 1 }
  0x38   : > { %670 = vmatprep.subr.mxu0 %v1801_v34  ;;  %1674 = vmatprep.subr.mxu1 %v1801_v34  ;;  %v471_v37 = vld [vmem:[%s2482_s1 + $0x60] sm:$0xff]  ;;  %v332_v38 = vld [vmem:[%s1947_s14 + $0x8] sm:$0xff]  ;;  %v470_v39 = vld [vmem:[%s2482_s1 + $0x58] sm:$0xff] }
  0x39   : > { %671 = vmatpush1.msra.mxu0 %v474_v33  ;;  %1692 = vmatpush1.msra.mxu1 %v474_v33  ;;  %v469_v40 = vld [vmem:[%s2482_s1 + $0x50] sm:$0xff]  ;;  %v468_v41 = vld [vmem:[%s2482_s1 + $0x48] sm:$0xff]  ;;  %v467_v42 = vld [vmem:[%s2482_s1 + $0x40] sm:$0xff] }
  0x3a   : > { %672 = vmatprep.subr.mxu0 %v1801_v34  ;;  %1675 = vmatprep.subr.mxu1 %v1801_v34  ;;  %v466_v43 = vld [vmem:[%s2482_s1 + $0x38] sm:$0xff]  ;;  %v465_v44 = vld [vmem:[%s2482_s1 + $0x30] sm:$0xff]  ;;  %v464_v45 = vld [vmem:[%s2482_s1 + $0x28] sm:$0xff] }
  0x3b   : > { %673 = vmatpush1.msra.mxu0 %v473_v35  ;;  %1693 = vmatpush1.msra.mxu1 %v473_v35  ;;  %v463_v46 = vld [vmem:[%s2482_s1 + $0x20] sm:$0xff]  ;;  %v462_v47 = vld [vmem:[%s2482_s1 + $0x18] sm:$0xff]  ;;  %v461_v48 = vld [vmem:[%s2482_s1 + $0x10] sm:$0xff] }
  0x3c   : > { %674 = vmatprep.subr.mxu0 %v1801_v34  ;;  %1676 = vmatprep.subr.mxu1 %v1801_v34  ;;  %v460_v49 = vld [vmem:[%s2482_s1 + $0x8] sm:$0xff]  ;;  %v459_v50 = vld [vmem:[%s2482_s1] sm:$0xff]  ;;  %v334_v54 = vld [vmem:[%s1947_s14 + $0x18] sm:$0xff] }
  0x3d   : > { %675 = vmatpush1.msra.mxu0 %v472_v36  ;;  %1694 = vmatpush1.msra.mxu1 %v472_v36  ;;  %v476_v51 = vld [vmem:[%s2482_s1 + $0x88] sm:$0xff]  ;;  %v475_v52 = vld [vmem:[%s2482_s1 + $0x80] sm:$0xff]  ;;  %v414_v57 = vld [vmem:[%s1947_s14 + $0x298] sm:$0xff] }
  0x3e   : > { %676 = vmatprep.subr.mxu0 %v1801_v34  ;;  %1491 = vmatprep.mubr.msk.f32.mxu0 %vm477_vm0, %v332_v38  ;;  %v331_v53 = vld [vmem:[%s1947_s14] sm:$0xff]  ;;  %v412_v55 = vld [vmem:[%s1947_s14 + $0x288] sm:$0xff]  ;;  %v333_v58 = vld [vmem:[%s1947_s14 + $0x10] sm:$0xff] }
  0x3f   : > { %677 = vmatpush1.msra.mxu0 %v471_v37  ;;  %1677 = vmatprep.subr.mxu1 %v1801_v34  ;;  %v411_v56 = vld [vmem:[%s1947_s14 + $0x280] sm:$0xff]  ;;  %v336_v59 = vld [vmem:[%s1947_s14 + $0x28] sm:$0xff]  ;;  %v413_v60 = vld [vmem:[%s1947_s14 + $0x290] sm:$0xff] }
  0x40   : > { %678 = vmatprep.subr.mxu0 %v1801_v34  ;;  %1695 = vmatpush1.msra.mxu1 %v471_v37  ;;  %v416_v61 = vld [vmem:[%s1947_s14 + $0x2a8] sm:$0xff]  ;;  %v335_v62 = vld [vmem:[%s1947_s14 + $0x20] sm:$0xff]  ;;  %v338_v63 = vld [vmem:[%s1947_s14 + $0x38] sm:$0xff] }
  0x41   : > { %679 = vmatpush1.msra.mxu0 %v470_v39  ;;  %1678 = vmatprep.subr.mxu1 %v1801_v34  ;;  %v415_v0 = vld [vmem:[%s1947_s14 + $0x2a0] sm:$0xff]  ;;  %v418_v1 = vld [vmem:[%s1947_s14 + $0x2b8] sm:$0xff]  ;;  %v337_v2 = vld [vmem:[%s1947_s14 + $0x30] sm:$0xff] }
  0x42   : > { %680 = vmatprep.subr.mxu0 %v1801_v34  ;;  %1696 = vmatpush1.msra.mxu1 %v470_v39  ;;  %v340_v3 = vld [vmem:[%s1947_s14 + $0x48] sm:$0xff]  ;;  %v417_v4 = vld [vmem:[%s1947_s14 + $0x2b0] sm:$0xff]  ;;  %v339_v6 = vld [vmem:[%s1947_s14 + $0x40] sm:$0xff] }
  0x43   : > { %681 = vmatpush1.msra.mxu0 %v469_v40  ;;  %1679 = vmatprep.subr.mxu1 %v1801_v34  ;;  %v420_v5 = vld [vmem:[%s1947_s14 + $0x2c8] sm:$0xff]  ;;  %v342_v7 = vld [vmem:[%s1947_s14 + $0x58] sm:$0xff]  ;;  %v419_v8 = vld [vmem:[%s1947_s14 + $0x2c0] sm:$0xff] }
  0x44   : > { %682 = vmatprep.subr.mxu0 %v1801_v34  ;;  %1697 = vmatpush1.msra.mxu1 %v469_v40  ;;  %v422_v9 = vld [vmem:[%s1947_s14 + $0x2d8] sm:$0xff]  ;;  %v341_v10 = vld [vmem:[%s1947_s14 + $0x50] sm:$0xff]  ;;  %v344_v11 = vld [vmem:[%s1947_s14 + $0x68] sm:$0xff] }
  0x45   : > { %683 = vmatpush1.msra.mxu0 %v468_v41  ;;  %1680 = vmatprep.subr.mxu1 %v1801_v34  ;;  %v421_v12 = vld [vmem:[%s1947_s14 + $0x2d0] sm:$0xff]  ;;  %v424_v13 = vld [vmem:[%s1947_s14 + $0x2e8] sm:$0xff]  ;;  %v343_v14 = vld [vmem:[%s1947_s14 + $0x60] sm:$0xff] }
  0x46   : > { %684 = vmatprep.subr.mxu0 %v1801_v34  ;;  %1698 = vmatpush1.msra.mxu1 %v468_v41  ;;  %v346_v15 = vld [vmem:[%s1947_s14 + $0x78] sm:$0xff]  ;;  %v423_v16 = vld [vmem:[%s1947_s14 + $0x2e0] sm:$0xff]  ;;  %v345_v18 = vld [vmem:[%s1947_s14 + $0x70] sm:$0xff] }
  0x47   : > { %685 = vmatpush1.msra.mxu0 %v467_v42  ;;  %1681 = vmatprep.subr.mxu1 %v1801_v34  ;;  %v426_v17 = vld [vmem:[%s1947_s14 + $0x2f8] sm:$0xff]  ;;  %v348_v19 = vld [vmem:[%s1947_s14 + $0x88] sm:$0xff]  ;;  %v425_v20 = vld [vmem:[%s1947_s14 + $0x2f0] sm:$0xff] }
  0x48   : > { %686 = vmatprep.subr.mxu0 %v1801_v34  ;;  %1699 = vmatpush1.msra.mxu1 %v467_v42  ;;  %v428_v21 = vld [vmem:[%s1947_s14 + $0x308] sm:$0xff]  ;;  %v347_v22 = vld [vmem:[%s1947_s14 + $0x80] sm:$0xff]  ;;  %v350_v23 = vld [vmem:[%s1947_s14 + $0x98] sm:$0xff] }
  0x49   : > { %687 = vmatpush1.msra.mxu0 %v466_v43  ;;  %1682 = vmatprep.subr.mxu1 %v1801_v34  ;;  %v427_v24 = vld [vmem:[%s1947_s14 + $0x300] sm:$0xff]  ;;  %v430_v25 = vld [vmem:[%s1947_s14 + $0x318] sm:$0xff]  ;;  %v349_v26 = vld [vmem:[%s1947_s14 + $0x90] sm:$0xff] }
  0x4a   : > { %688 = vmatprep.subr.mxu0 %v1801_v34  ;;  %1700 = vmatpush1.msra.mxu1 %v466_v43  ;;  %v352_v27 = vld [vmem:[%s1947_s14 + $0xa8] sm:$0xff]  ;;  %v429_v28 = vld [vmem:[%s1947_s14 + $0x310] sm:$0xff]  ;;  %v351_v30 = vld [vmem:[%s1947_s14 + $0xa0] sm:$0xff] }
  0x4b   : > { %689 = vmatpush1.msra.mxu0 %v465_v44  ;;  %1683 = vmatprep.subr.mxu1 %v1801_v34  ;;  %v432_v29 = vld [vmem:[%s1947_s14 + $0x328] sm:$0xff]  ;;  %v354_v31 = vld [vmem:[%s1947_s14 + $0xb8] sm:$0xff]  ;;  %v431_v32 = vld [vmem:[%s1947_s14 + $0x320] sm:$0xff] }
  0x4c   : > { %690 = vmatprep.subr.mxu0 %v1801_v34  ;;  %1701 = vmatpush1.msra.mxu1 %v465_v44  ;;  %v434_v33 = vld [vmem:[%s1947_s14 + $0x338] sm:$0xff]  ;;  %v356_v35 = vld [vmem:[%s1947_s14 + $0xc8] sm:$0xff]  ;;  %v433_v36 = vld [vmem:[%s1947_s14 + $0x330] sm:$0xff] }
  0x4d   : > { %691 = vmatpush1.msra.mxu0 %v464_v45  ;;  %1684 = vmatprep.subr.mxu1 %v1801_v34  ;;  %v436_v37 = vld [vmem:[%s1947_s14 + $0x348] sm:$0xff]  ;;  %v355_v38 = vld [vmem:[%s1947_s14 + $0xc0] sm:$0xff]  ;;  %v358_v39 = vld [vmem:[%s1947_s14 + $0xd8] sm:$0xff] }
  0x4e   : > { %692 = vmatprep.subr.mxu0 %v1801_v34  ;;  %1702 = vmatpush1.msra.mxu1 %v464_v45  ;;  %v435_v40 = vld [vmem:[%s1947_s14 + $0x340] sm:$0xff]  ;;  %v438_v41 = vld [vmem:[%s1947_s14 + $0x358] sm:$0xff]  ;;  %v357_v42 = vld [vmem:[%s1947_s14 + $0xd0] sm:$0xff] }
  0x4f   : > { %693 = vmatpush1.msra.mxu0 %v463_v46  ;;  %1685 = vmatprep.subr.mxu1 %v1801_v34  ;;  %v360_v43 = vld [vmem:[%s1947_s14 + $0xe8] sm:$0xff]  ;;  %v437_v44 = vld [vmem:[%s1947_s14 + $0x350] sm:$0xff] }
  0x50   : > { %694 = vmatprep.subr.mxu0 %v1801_v34  ;;  %1703 = vmatpush1.msra.mxu1 %v463_v46  ;;  %v440_v45 = vld [vmem:[%s1947_s14 + $0x368] sm:$0xff]  ;;  %v359_v46 = vld [vmem:[%s1947_s14 + $0xe0] sm:$0xff] }
  0x51   : > { %695 = vmatpush1.msra.mxu0 %v462_v47  ;;  %1686 = vmatprep.subr.mxu1 %v1801_v34 }
  0x52   : > { %696 = vmatprep.subr.mxu0 %v1801_v34  ;;  %1704 = vmatpush1.msra.mxu1 %v462_v47  ;;  %v362_v47 = vld [vmem:[%s1947_s14 + $0xf8] sm:$0xff] }
  0x53   : > { %697 = vmatpush1.msra.mxu0 %v461_v48  ;;  %1687 = vmatprep.subr.mxu1 %v1801_v34 }
  0x54   : > { %698 = vmatprep.subr.mxu0 %v1801_v34  ;;  %1705 = vmatpush1.msra.mxu1 %v461_v48  ;;  %v439_v48 = vld [vmem:[%s1947_s14 + $0x360] sm:$0xff] }
  0x55   : > { %699 = vmatpush1.msra.mxu0 %v460_v49  ;;  %1688 = vmatprep.subr.mxu1 %v1801_v34 }
  0x56   : > { %700 = vmatprep.subr.mxu0 %v1801_v34  ;;  %1706 = vmatpush1.msra.mxu1 %v460_v49  ;;  %v442_v49 = vld [vmem:[%s1947_s14 + $0x378] sm:$0xff] }
  0x57   : > { %701 = vmatpush1.msra.mxu0 %v459_v50  ;;  %1689 = vmatprep.subr.mxu1 %v1801_v34 }
  0x58   : > { %730 = vmatprep.subr.mxu0 %v1801_v34  ;;  %1707 = vmatpush1.msra.mxu1 %v459_v50  ;;  %v361_v50 = vld [vmem:[%s1947_s14 + $0xf0] sm:$0xff] }
  0x59   : > { %731 = vmatpush2.msra.mxu0 %v476_v51  ;;  %1690 = vmatprep.subr.mxu1 %v1801_v34 }
  0x5a   : > { %732 = vmatprep.subr.mxu0 %v1801_v34  ;;  %1708 = vmatpush2.msra.mxu1 %v476_v51  ;;  %v364_v51 = vld [vmem:[%s1947_s14 + $0x108] sm:$0xff] }
  0x5b   : > { %733 = vmatpush2.msra.mxu0 %v475_v52  ;;  %1691 = vmatprep.subr.mxu1 %v1801_v34  ;;  %v353_v34 = vld [vmem:[%s1947_s14 + $0xb0] sm:$0xff] }
  0x5c   : > { %735 = vmatmul.mubr.f32.vlgmr.msra.gmra.mxu0 %v331_v53  ;;  %1709 = vmatpush2.msra.mxu1 %v475_v52  ;;  %v441_v52 = vld [vmem:[%s1947_s14 + $0x370] sm:$0xff]  ;;  %v444_v53 = vld [vmem:[%s1947_s14 + $0x388] sm:$0xff] }
  0x5d   : > { %1492 = vmatprep.mubr.msk.f32.mxu0 %vm477_vm0, %v334_v54  ;;  %1531 = vmatprep.mubr.msk.f32.mxu1 %vm477_vm0, %v412_v55  ;;  %v363_v54 = vld [vmem:[%s1947_s14 + $0x100] sm:$0xff]  ;;  %v366_v55 = vld [vmem:[%s1947_s14 + $0x118] sm:$0xff] }
  0x5e   : > { %935 = vmatmul.mubr.f32.vlgmr.msra.gmra.mxu1 %v411_v56  ;;  %v443_v56 = vld [vmem:[%s1947_s14 + $0x380] sm:$0xff] }
  0x5f   : > { %1532 = vmatprep.mubr.msk.f32.mxu1 %vm477_vm0, %v414_v57  ;;  %v446_v57 = vld [vmem:[%s1947_s14 + $0x398] sm:$0xff] }
  0x60   : > { %740 = vmatmul.mubr.f32.gmra.mxu0 %v333_v58  ;;  %v365_v58 = vld [vmem:[%s1947_s14 + $0x110] sm:$0xff] }
  0x61   : > { %1493 = vmatprep.mubr.msk.f32.mxu0 %vm477_vm0, %v336_v59  ;;  %v368_v59 = vld [vmem:[%s1947_s14 + $0x128] sm:$0xff] }
  0x62   : > { %940 = vmatmul.mubr.f32.gmra.mxu1 %v413_v60  ;;  %v445_v60 = vld [vmem:[%s1947_s14 + $0x390] sm:$0xff] }
  0x63   : > { %1533 = vmatprep.mubr.msk.f32.mxu1 %vm477_vm0, %v416_v61  ;;  %v448_v61 = vld [vmem:[%s1947_s14 + $0x3a8] sm:$0xff] }
  0x64   : > { %745 = vmatmul.mubr.f32.gmra.mxu0 %v335_v62  ;;  %v367_v62 = vld [vmem:[%s1947_s14 + $0x120] sm:$0xff] }
  0x65   : > { %1494 = vmatprep.mubr.msk.f32.mxu0 %vm477_vm0, %v338_v63  ;;  %v370_v63 = vld [vmem:[%s1947_s14 + $0x138] sm:$0xff] }
  0x66   : > { %945 = vmatmul.mubr.f32.gmra.mxu1 %v415_v0  ;;  %v447_v0 = vld [vmem:[%s1947_s14 + $0x3a0] sm:$0xff] }
  0x67   : > { %1534 = vmatprep.mubr.msk.f32.mxu1 %vm477_vm0, %v418_v1  ;;  %v450_v1 = vld [vmem:[%s1947_s14 + $0x3b8] sm:$0xff] }
  0x68   : > { %750 = vmatmul.mubr.f32.gmra.mxu0 %v337_v2  ;;  %v369_v2 = vld [vmem:[%s1947_s14 + $0x130] sm:$0xff] }
  0x69   : > { %1495 = vmatprep.mubr.msk.f32.mxu0 %vm477_vm0, %v340_v3  ;;  %v372_v3 = vld [vmem:[%s1947_s14 + $0x148] sm:$0xff] }
  0x6a   : > { %950 = vmatmul.mubr.f32.gmra.mxu1 %v417_v4  ;;  %v449_v4 = vld [vmem:[%s1947_s14 + $0x3b0] sm:$0xff] }
  0x6b   : > { %1535 = vmatprep.mubr.msk.f32.mxu1 %vm477_vm0, %v420_v5  ;;  %v452_v5 = vld [vmem:[%s1947_s14 + $0x3c8] sm:$0xff] }
  0x6c   : > { %755 = vmatmul.mubr.f32.gmra.mxu0 %v339_v6  ;;  %v371_v6 = vld [vmem:[%s1947_s14 + $0x140] sm:$0xff] }
  0x6d   : > { %1496 = vmatprep.mubr.msk.f32.mxu0 %vm477_vm0, %v342_v7  ;;  %v374_v7 = vld [vmem:[%s1947_s14 + $0x158] sm:$0xff] }
  0x6e   : > { %955 = vmatmul.mubr.f32.gmra.mxu1 %v419_v8  ;;  %v451_v8 = vld [vmem:[%s1947_s14 + $0x3c0] sm:$0xff] }
  0x6f   : > { %1536 = vmatprep.mubr.msk.f32.mxu1 %vm477_vm0, %v422_v9  ;;  %v454_v9 = vld [vmem:[%s1947_s14 + $0x3d8] sm:$0xff] }
  0x70   : > { %760 = vmatmul.mubr.f32.gmra.mxu0 %v341_v10  ;;  %v373_v10 = vld [vmem:[%s1947_s14 + $0x150] sm:$0xff] }
  0x71   : > { %1497 = vmatprep.mubr.msk.f32.mxu0 %vm477_vm0, %v344_v11  ;;  %v376_v11 = vld [vmem:[%s1947_s14 + $0x168] sm:$0xff] }
  0x72   : > { %960 = vmatmul.mubr.f32.gmra.mxu1 %v421_v12  ;;  %v453_v12 = vld [vmem:[%s1947_s14 + $0x3d0] sm:$0xff] }
  0x73   : > { %1537 = vmatprep.mubr.msk.f32.mxu1 %vm477_vm0, %v424_v13  ;;  %v456_v13 = vld [vmem:[%s1947_s14 + $0x3e8] sm:$0xff] }
  0x74   : > { %765 = vmatmul.mubr.f32.gmra.mxu0 %v343_v14  ;;  %v375_v14 = vld [vmem:[%s1947_s14 + $0x160] sm:$0xff] }
  0x75   : > { %1498 = vmatprep.mubr.msk.f32.mxu0 %vm477_vm0, %v346_v15  ;;  %v378_v15 = vld [vmem:[%s1947_s14 + $0x178] sm:$0xff] }
  0x76   : > { %965 = vmatmul.mubr.f32.gmra.mxu1 %v423_v16  ;;  %v455_v16 = vld [vmem:[%s1947_s14 + $0x3e0] sm:$0xff] }
  0x77   : > { %1538 = vmatprep.mubr.msk.f32.mxu1 %vm477_vm0, %v426_v17  ;;  %v458_v17 = vld [vmem:[%s1947_s14 + $0x3f8] sm:$0xff] }
  0x78   : > { %770 = vmatmul.mubr.f32.gmra.mxu0 %v345_v18  ;;  %v377_v18 = vld [vmem:[%s1947_s14 + $0x170] sm:$0xff] }
  0x79   : > { %1499 = vmatprep.mubr.msk.f32.mxu0 %vm477_vm0, %v348_v19  ;;  %v380_v19 = vld [vmem:[%s1947_s14 + $0x188] sm:$0xff] }
  0x7a   : > { %970 = vmatmul.mubr.f32.gmra.mxu1 %v425_v20  ;;  %v457_v20 = vld [vmem:[%s1947_s14 + $0x3f0] sm:$0xff] }
  0x7b   : > { %1539 = vmatprep.mubr.msk.f32.mxu1 %vm477_vm0, %v428_v21  ;;  %v379_v21 = vld [vmem:[%s1947_s14 + $0x180] sm:$0xff] }
  0x7c   : > { %775 = vmatmul.mubr.f32.gmra.mxu0 %v347_v22  ;;  %v382_v22 = vld [vmem:[%s1947_s14 + $0x198] sm:$0xff] }
  0x7d   : > { %1500 = vmatprep.mubr.msk.f32.mxu0 %vm477_vm0, %v350_v23  ;;  %v381_v23 = vld [vmem:[%s1947_s14 + $0x190] sm:$0xff] }
  0x7e   : > { %975 = vmatmul.mubr.f32.gmra.mxu1 %v427_v24  ;;  %v384_v24 = vld [vmem:[%s1947_s14 + $0x1a8] sm:$0xff] }
  0x7f   : > { %1540 = vmatprep.mubr.msk.f32.mxu1 %vm477_vm0, %v430_v25  ;;  %v383_v25 = vld [vmem:[%s1947_s14 + $0x1a0] sm:$0xff] }
  0x80   : > { %780 = vmatmul.mubr.f32.gmra.mxu0 %v349_v26  ;;  %v386_v26 = vld [vmem:[%s1947_s14 + $0x1b8] sm:$0xff] }
  0x81   : > { %1501 = vmatprep.mubr.msk.f32.mxu0 %vm477_vm0, %v352_v27  ;;  %v385_v27 = vld [vmem:[%s1947_s14 + $0x1b0] sm:$0xff] }
  0x82   : > { %980 = vmatmul.mubr.f32.gmra.mxu1 %v429_v28  ;;  %v388_v28 = vld [vmem:[%s1947_s14 + $0x1c8] sm:$0xff] }
  0x83   : > { %1541 = vmatprep.mubr.msk.f32.mxu1 %vm477_vm0, %v432_v29  ;;  %v387_v29 = vld [vmem:[%s1947_s14 + $0x1c0] sm:$0xff] }
  0x84   : > { %785 = vmatmul.mubr.f32.gmra.mxu0 %v351_v30  ;;  %v390_v30 = vld [vmem:[%s1947_s14 + $0x1d8] sm:$0xff] }
  0x85   : > { %1502 = vmatprep.mubr.msk.f32.mxu0 %vm477_vm0, %v354_v31  ;;  %v389_v31 = vld [vmem:[%s1947_s14 + $0x1d0] sm:$0xff] }
  0x86   : > { %985 = vmatmul.mubr.f32.gmra.mxu1 %v431_v32  ;;  %v392_v32 = vld [vmem:[%s1947_s14 + $0x1e8] sm:$0xff] }
  0x87   : > { %1542 = vmatprep.mubr.msk.f32.mxu1 %vm477_vm0, %v434_v33  ;;  %v391_v33 = vld [vmem:[%s1947_s14 + $0x1e0] sm:$0xff] }
  0x88   : > { %790 = vmatmul.mubr.f32.gmra.mxu0 %v353_v34  ;;  %v394_v34 = vld [vmem:[%s1947_s14 + $0x1f8] sm:$0xff] }
  0x89   : > { %1503 = vmatprep.mubr.msk.f32.mxu0 %vm477_vm0, %v356_v35  ;;  %v393_v35 = vld [vmem:[%s1947_s14 + $0x1f0] sm:$0xff] }
  0x8a   : > { %990 = vmatmul.mubr.f32.gmra.mxu1 %v433_v36  ;;  %v396_v36 = vld [vmem:[%s1947_s14 + $0x208] sm:$0xff] }
  0x8b   : > { %1543 = vmatprep.mubr.msk.f32.mxu1 %vm477_vm0, %v436_v37  ;;  %v395_v37 = vld [vmem:[%s1947_s14 + $0x200] sm:$0xff] }
  0x8c   : > { %795 = vmatmul.mubr.f32.gmra.mxu0 %v355_v38  ;;  %v398_v38 = vld [vmem:[%s1947_s14 + $0x218] sm:$0xff] }
  0x8d   : > { %1504 = vmatprep.mubr.msk.f32.mxu0 %vm477_vm0, %v358_v39  ;;  %v397_v39 = vld [vmem:[%s1947_s14 + $0x210] sm:$0xff] }
  0x8e   : > { %995 = vmatmul.mubr.f32.gmra.mxu1 %v435_v40  ;;  %v400_v40 = vld [vmem:[%s1947_s14 + $0x228] sm:$0xff] }
  0x8f   : > { %1544 = vmatprep.mubr.msk.f32.mxu1 %vm477_vm0, %v438_v41  ;;  %v399_v41 = vld [vmem:[%s1947_s14 + $0x220] sm:$0xff] }
  0x90   : > { %800 = vmatmul.mubr.f32.gmra.mxu0 %v357_v42  ;;  %v402_v42 = vld [vmem:[%s1947_s14 + $0x238] sm:$0xff] }
  0x91   : > { %1505 = vmatprep.mubr.msk.f32.mxu0 %vm477_vm0, %v360_v43  ;;  %v401_v43 = vld [vmem:[%s1947_s14 + $0x230] sm:$0xff] }
  0x92   : > { %1000 = vmatmul.mubr.f32.gmra.mxu1 %v437_v44  ;;  %v404_v44 = vld [vmem:[%s1947_s14 + $0x248] sm:$0xff] }
  0x93   : > { %1545 = vmatprep.mubr.msk.f32.mxu1 %vm477_vm0, %v440_v45  ;;  %v403_v45 = vld [vmem:[%s1947_s14 + $0x240] sm:$0xff] }
  0x94   : > { %805 = vmatmul.mubr.f32.gmra.mxu0 %v359_v46  ;;  %v406_v46 = vld [vmem:[%s1947_s14 + $0x258] sm:$0xff] }
  0x95   : > { %1506 = vmatprep.mubr.msk.f32.mxu0 %vm477_vm0, %v362_v47  ;;  %v405_v47 = vld [vmem:[%s1947_s14 + $0x250] sm:$0xff] }
  0x96   : > { %1005 = vmatmul.mubr.f32.gmra.mxu1 %v439_v48  ;;  %v408_v48 = vld [vmem:[%s1947_s14 + $0x268] sm:$0xff] }
  0x97   : > { %1546 = vmatprep.mubr.msk.f32.mxu1 %vm477_vm0, %v442_v49  ;;  %v407_v49 = vld [vmem:[%s1947_s14 + $0x260] sm:$0xff] }
  0x98   : > { %810 = vmatmul.mubr.f32.gmra.mxu0 %v361_v50  ;;  %v410_v50 = vld [vmem:[%s1947_s14 + $0x278] sm:$0xff] }
  0x99   : > { %1507 = vmatprep.mubr.msk.f32.mxu0 %vm477_vm0, %v364_v51  ;;  %v409_v51 = vld [vmem:[%s1947_s14 + $0x270] sm:$0xff] }
  0x9a   : > { %1010 = vmatmul.mubr.f32.gmra.mxu1 %v441_v52 }
  0x9b   : > { %1547 = vmatprep.mubr.msk.f32.mxu1 %vm477_vm0, %v444_v53 }
  0x9c   : > { %815 = vmatmul.mubr.f32.gmra.mxu0 %v363_v54 }
  0x9d   : > { %1508 = vmatprep.mubr.msk.f32.mxu0 %vm477_vm0, %v366_v55 }
  0x9e   : > { %1015 = vmatmul.mubr.f32.gmra.mxu1 %v443_v56 }
  0x9f   : > { %1548 = vmatprep.mubr.msk.f32.mxu1 %vm477_vm0, %v446_v57 }
  0xa0   : > { %820 = vmatmul.mubr.f32.gmra.mxu0 %v365_v58 }
  0xa1   : > { %1509 = vmatprep.mubr.msk.f32.mxu0 %vm477_vm0, %v368_v59 }
  0xa2   : > { %1020 = vmatmul.mubr.f32.gmra.mxu1 %v445_v60 }
  0xa3   : > { %1549 = vmatprep.mubr.msk.f32.mxu1 %vm477_vm0, %v448_v61 }
  0xa4   : > { %825 = vmatmul.mubr.f32.gmra.mxu0 %v367_v62 }
  0xa5   : > { %1510 = vmatprep.mubr.msk.f32.mxu0 %vm477_vm0, %v370_v63 }
  0xa6   : > { %1025 = vmatmul.mubr.f32.gmra.mxu1 %v447_v0 }
  0xa7   : > { %1550 = vmatprep.mubr.msk.f32.mxu1 %vm477_vm0, %v450_v1 }
  0xa8   : > { %830 = vmatmul.mubr.f32.gmra.mxu0 %v369_v2 }
  0xa9   : > { %1511 = vmatprep.mubr.msk.f32.mxu0 %vm477_vm0, %v372_v3 }
  0xaa   : > { %1030 = vmatmul.mubr.f32.gmra.mxu1 %v449_v4 }
  0xab   : > { %1551 = vmatprep.mubr.msk.f32.mxu1 %vm477_vm0, %v452_v5 }
  0xac   : > { %835 = vmatmul.mubr.f32.gmra.mxu0 %v371_v6 }
  0xad   : > { %1512 = vmatprep.mubr.msk.f32.mxu0 %vm477_vm0, %v374_v7 }
  0xae   : > { %1035 = vmatmul.mubr.f32.gmra.mxu1 %v451_v8 }
  0xaf   : > { %1552 = vmatprep.mubr.msk.f32.mxu1 %vm477_vm0, %v454_v9 }
  0xb0   : > { %840 = vmatmul.mubr.f32.gmra.mxu0 %v373_v10 }
  0xb1   : > { %1513 = vmatprep.mubr.msk.f32.mxu0 %vm477_vm0, %v376_v11 }
  0xb2   : > { %1040 = vmatmul.mubr.f32.gmra.mxu1 %v453_v12 }
  0xb3   : > { %1553 = vmatprep.mubr.msk.f32.mxu1 %vm477_vm0, %v456_v13 }
  0xb4   : > { %845 = vmatmul.mubr.f32.gmra.mxu0 %v375_v14 }
  0xb5   : > { %1514 = vmatprep.mubr.msk.f32.mxu0 %vm477_vm0, %v378_v15  ;;  %v1064_v15 = vld [vmem:[%s1949_s15 + $0x8] sm:$0xff] }
  0xb6   : > { %1045 = vmatmul.mubr.f32.gmra.mxu1 %v455_v16 }
  0xb7   : > { %1554 = vmatprep.mubr.msk.f32.mxu1 %vm477_vm0, %v458_v17 }
  0xb8   : > { %850 = vmatmul.mubr.f32.gmra.mxu0 %v377_v18 }
  0xb9   : > { %1515 = vmatprep.mubr.msk.f32.mxu0 %vm477_vm0, %v380_v19 }
  0xba   : > { %1050 = vmatmul.mubr.f32.gmra.mxu1 %v457_v20 }
  0xbb   : > { %1159 = vmatprep.mubr.f32.mxu1 %v1064_v15 }
  0xbc   : > { %855 = vmatmul.mubr.f32.gmra.mxu0 %v379_v21 }
  0xbd   : > { %1516 = vmatprep.mubr.msk.f32.mxu0 %vm477_vm0, %v382_v22 }
  0xc0   : > { %860 = vmatmul.mubr.f32.gmra.mxu0 %v381_v23 }
  0xc1   : > { %1517 = vmatprep.mubr.msk.f32.mxu0 %vm477_vm0, %v384_v24 }
  0xc4   : > { %865 = vmatmul.mubr.f32.gmra.mxu0 %v383_v25 }
  0xc5   : > { %1518 = vmatprep.mubr.msk.f32.mxu0 %vm477_vm0, %v386_v26 }
  0xc8   : > { %870 = vmatmul.mubr.f32.gmra.mxu0 %v385_v27 }
  0xc9   : > { %1519 = vmatprep.mubr.msk.f32.mxu0 %vm477_vm0, %v388_v28 }
  0xcc   : > { %875 = vmatmul.mubr.f32.gmra.mxu0 %v387_v29 }
  0xcd   : > { %1520 = vmatprep.mubr.msk.f32.mxu0 %vm477_vm0, %v390_v30 }
  0xd0   : > { %880 = vmatmul.mubr.f32.gmra.mxu0 %v389_v31 }
  0xd1   : > { %1521 = vmatprep.mubr.msk.f32.mxu0 %vm477_vm0, %v392_v32 }
  0xd4   : > { %885 = vmatmul.mubr.f32.gmra.mxu0 %v391_v33 }
  0xd5   : > { %1522 = vmatprep.mubr.msk.f32.mxu0 %vm477_vm0, %v394_v34 }
  0xd8   : > { %890 = vmatmul.mubr.f32.gmra.mxu0 %v393_v35 }
  0xd9   : > { %1523 = vmatprep.mubr.msk.f32.mxu0 %vm477_vm0, %v396_v36 }
  0xdc   : > { %895 = vmatmul.mubr.f32.gmra.mxu0 %v395_v37 }
  0xdd   : > { %1524 = vmatprep.mubr.msk.f32.mxu0 %vm477_vm0, %v398_v38 }
  0xe0   : > { %900 = vmatmul.mubr.f32.gmra.mxu0 %v397_v39 }
  0xe1   : > { %1525 = vmatprep.mubr.msk.f32.mxu0 %vm477_vm0, %v400_v40 }
  0xe4   : > { %905 = vmatmul.mubr.f32.gmra.mxu0 %v399_v41 }
  0xe5   : > { %1526 = vmatprep.mubr.msk.f32.mxu0 %vm477_vm0, %v402_v42 }
  0xe8   : > { %910 = vmatmul.mubr.f32.gmra.mxu0 %v401_v43 }
  0xe9   : > { %1527 = vmatprep.mubr.msk.f32.mxu0 %vm477_vm0, %v404_v44 }
  0xec   : > { %915 = vmatmul.mubr.f32.gmra.mxu0 %v403_v45 }
  0xed   : > { %1528 = vmatprep.mubr.msk.f32.mxu0 %vm477_vm0, %v406_v46 }
  0xf0   : > { %920 = vmatmul.mubr.f32.gmra.mxu0 %v405_v47 }
  0xf1   : > { %1529 = vmatprep.mubr.msk.f32.mxu0 %vm477_vm0, %v408_v48 }
  0xf4   : > { %925 = vmatmul.mubr.f32.gmra.mxu0 %v407_v49 }
  0xf5   : > { %1530 = vmatprep.mubr.msk.f32.mxu0 %vm477_vm0, %v410_v50 }
  0xf8   : > { %930 = vmatmul.mubr.f32.gmra.mxu0 %v409_v51 }
 0x11c   : > { %v2234_v52 = vpop.f32.mrf.mxu0 }
 0x11e   : > { %v738_v53 = vpop.f32.mrf.mxu0  ;;  %v2236_v54 = vpop.f32.mrf.mxu1 }
 0x120   : > { %v2238_v55 = vpop.f32.mrf.mxu0  ;;  %v938_v56 = vpop.f32.mrf.mxu1 }
 0x122   : > { %v743_v57 = vpop.f32.mrf.mxu0  ;;  %v2240_v58 = vpop.f32.mrf.mxu1 }
 0x124   : > { %v2242_v59 = vpop.f32.mrf.mxu0  ;;  %v943_v60 = vpop.f32.mrf.mxu1 }
 0x126   : > { %v748_v61 = vpop.f32.mrf.mxu0  ;;  %v2244_v62 = vpop.f32.mrf.mxu1 }
 0x128   : > { %v2246_v63 = vpop.f32.mrf.mxu0  ;;  %v948_v0 = vpop.f32.mrf.mxu1 }
 0x12a   : > { %v753_v1 = vpop.f32.mrf.mxu0  ;;  %v2248_v2 = vpop.f32.mrf.mxu1 }
 0x12c   : > { %v2250_v3 = vpop.f32.mrf.mxu0  ;;  %v953_v4 = vpop.f32.mrf.mxu1 }
 0x12e   : > { %v758_v5 = vpop.f32.mrf.mxu0  ;;  %v2252_v6 = vpop.f32.mrf.mxu1 }
 0x130   : > { %v2254_v7 = vpop.f32.mrf.mxu0  ;;  %v958_v8 = vpop.f32.mrf.mxu1 }
 0x132   : > { %v763_v9 = vpop.f32.mrf.mxu0  ;;  %v2256_v10 = vpop.f32.mrf.mxu1 }
 0x134   : > { %v2258_v11 = vpop.f32.mrf.mxu0  ;;  %v963_v12 = vpop.f32.mrf.mxu1 }
 0x136   : > { %v768_v13 = vpop.f32.mrf.mxu0  ;;  %v2260_v14 = vpop.f32.mrf.mxu1 }
 0x138   : > { %v2263_v16 = vpop.f32.mrf.mxu0  ;;  %v968_v17 = vpop.f32.mrf.mxu1 }
 0x13a   : > { %v773_v18 = vpop.f32.mrf.mxu0  ;;  %v2265_v19 = vpop.f32.mrf.mxu1 }
 0x13c   : > { %v2267_v20 = vpop.f32.mrf.mxu0  ;;  %v973_v21 = vpop.f32.mrf.mxu1 }
 0x13e   : > { %v778_v22 = vpop.f32.mrf.mxu0  ;;  %v2269_v23 = vpop.f32.mrf.mxu1 }
 0x13f   : > { %2487 = vst [vmem:[#allocation6_spill] sm:$0xff] %v2269_v23 }
 0x140   : > { %v2271_v24 = vpop.f32.mrf.mxu0  ;;  %v978_v25 = vpop.f32.mrf.mxu1 }
 0x142   : > { %v783_v26 = vpop.f32.mrf.mxu0  ;;  %v2273_v27 = vpop.f32.mrf.mxu1 }
 0x143   : > { %2488 = vst [vmem:[#allocation7_spill] sm:$0xff] %v2273_v27 }
 0x144   : > { %v2275_v28 = vpop.f32.mrf.mxu0  ;;  %v983_v29 = vpop.f32.mrf.mxu1 }
 0x146   : > { %v788_v30 = vpop.f32.mrf.mxu0  ;;  %v2277_v31 = vpop.f32.mrf.mxu1 }
 0x148   : > { %v2279_v32 = vpop.f32.mrf.mxu0  ;;  %v988_v33 = vpop.f32.mrf.mxu1 }
 0x14a   : > { %v793_v34 = vpop.f32.mrf.mxu0  ;;  %v2281_v35 = vpop.f32.mrf.mxu1 }
 0x14c   : > { %v2283_v36 = vpop.f32.mrf.mxu0  ;;  %v993_v37 = vpop.f32.mrf.mxu1 }
 0x14e   : > { %v798_v38 = vpop.f32.mrf.mxu0  ;;  %v2285_v39 = vpop.f32.mrf.mxu1 }
 0x150   : > { %v2287_v40 = vpop.f32.mrf.mxu0  ;;  %v998_v41 = vpop.f32.mrf.mxu1 }
 0x152   : > { %v803_v42 = vpop.f32.mrf.mxu0  ;;  %v2289_v43 = vpop.f32.mrf.mxu1 }
 0x154   : > { %v806_v44 = vpop.f32.mrf.mxu0  ;;  %v1003_v45 = vpop.f32.mrf.mxu1 }
 0x156   : > { %v808_v46 = vpop.f32.mrf.mxu0  ;;  %v2291_v47 = vpop.f32.mrf.mxu1 }
 0x158   : > { %v811_v48 = vpop.f32.mrf.mxu0  ;;  %v1008_v49 = vpop.f32.mrf.mxu1 }
 0x15a   : > { %v813_v50 = vpop.f32.mrf.mxu0  ;;  %v2293_v51 = vpop.f32.mrf.mxu1 }
 0x15c   : > { %v2295_v53 = vpop.f32.mrf.mxu0  ;;  %v1013_v56 = vpop.f32.mrf.mxu1 }
 0x15e   : > { %v818_v57 = vpop.f32.mrf.mxu0  ;;  %v2297_v60 = vpop.f32.mrf.mxu1 }
 0x160   : > { %v2299_v61 = vpop.f32.mrf.mxu0  ;;  %v1018_v0 = vpop.f32.mrf.mxu1 }
 0x162   : > { %v823_v1 = vpop.f32.mrf.mxu0  ;;  %v2301_v4 = vpop.f32.mrf.mxu1 }
 0x164   : > { %v2303_v5 = vpop.f32.mrf.mxu0  ;;  %v1023_v8 = vpop.f32.mrf.mxu1 }
 0x166   : > { %v828_v9 = vpop.f32.mrf.mxu0  ;;  %v2305_v12 = vpop.f32.mrf.mxu1 }
 0x168   : > { %v2307_v13 = vpop.f32.mrf.mxu0  ;;  %v1028_v15 = vpop.f32.mrf.mxu1 }
 0x16a   : > { %v833_v17 = vpop.f32.mrf.mxu0  ;;  %v2309_v18 = vpop.f32.mrf.mxu1 }
 0x16c   : > { %v2311_v21 = vpop.f32.mrf.mxu0  ;;  %v1033_v22 = vpop.f32.mrf.mxu1 }
 0x16e   : > { %v838_v25 = vpop.f32.mrf.mxu0  ;;  %v2313_v26 = vpop.f32.mrf.mxu1 }
 0x170   : > { %v841_v29 = vpop.f32.mrf.mxu0  ;;  %v1038_v30 = vpop.f32.mrf.mxu1 }
 0x172   : > { %v843_v33 = vpop.f32.mrf.mxu0  ;;  %v2315_v34 = vpop.f32.mrf.mxu1 }
 0x174   : > { %v846_v37 = vpop.f32.mrf.mxu0  ;;  %v1043_v38 = vpop.f32.mrf.mxu1 }
 0x176   : > { %v848_v41 = vpop.f32.mrf.mxu0  ;;  %v2317_v42 = vpop.f32.mrf.mxu1 }
 0x178   : > { %v851_v45 = vpop.f32.mrf.mxu0  ;;  %v1048_v46 = vpop.f32.mrf.mxu1 }
 0x17a   : > { %v853_v49 = vpop.f32.mrf.mxu0  ;;  %v2319_v50 = vpop.f32.mrf.mxu1 }
 0x17c   : > { %v856_v56 = vpop.f32.mrf.mxu0  ;;  %v1053_v57 = vpop.f32.mrf.mxu1 }
 0x17e   : > { %v858_v0 = vpop.f32.mrf.mxu0 }
 0x180   : > { %v861_v1 = vpop.f32.mrf.mxu0 }
 0x182   : > { %v863_v8 = vpop.f32.mrf.mxu0 }
 0x184   : > { %v866_v9 = vpop.f32.mrf.mxu0 }
 0x186   : > { %v868_v15 = vpop.f32.mrf.mxu0 }
 0x188   : > { %v871_v17 = vpop.f32.mrf.mxu0 }
 0x18a   : > { %v873_v22 = vpop.f32.mrf.mxu0 }
 0x18c   : > { %v876_v25 = vpop.f32.mrf.mxu0 }
 0x18e   : > { %v878_v30 = vpop.f32.mrf.mxu0 }
 0x190   : > { %v881_v33 = vpop.f32.mrf.mxu0 }
 0x192   : > { %v883_v38 = vpop.f32.mrf.mxu0 }
 0x194   : > { %v886_v41 = vpop.f32.mrf.mxu0 }
 0x196   : > { %v888_v23 = vpop.f32.mrf.mxu0 }
 0x198   : > { %v891_v27 = vpop.f32.mrf.mxu0 }
 0x199   : > { %1562 = vmatprep.subr.mxu1 %v891_v27 }
 0x19a   : > { %v893_v46 = vpop.f32.mrf.mxu0  ;;  %1563 = vmatpush3.msra.mxu1 %v811_v48 }
 0x19b   : > { %1564 = vmatprep.subr.mxu1 %v886_v41 }
 0x19c   : > { %1565 = vmatpush3.msra.mxu1 %v806_v44  ;;  %v2321_v49 = vpop.f32.mrf.mxu0 }
 0x19d   : > { %1566 = vmatprep.subr.mxu1 %v881_v33 }
 0x19e   : > { %1567 = vmatpush3.msra.mxu1 %v2287_v40  ;;  %v898_v57 = vpop.f32.mrf.mxu0 }
 0x19f   : > { %1568 = vmatprep.subr.mxu1 %v876_v25 }
 0x1a0   : > { %1569 = vmatpush3.msra.mxu1 %v2283_v36  ;;  %v2325_v0 = vpop.f32.mrf.mxu0 }
 0x1a1   : > { %1570 = vmatprep.subr.mxu1 %v871_v17 }
 0x1a2   : > { %1571 = vmatpush3.msra.mxu1 %v2279_v32  ;;  %v903_v23 = vpop.f32.mrf.mxu0 }
 0x1a3   : > { %1572 = vmatprep.subr.mxu1 %v866_v9 }
 0x1a4   : > { %1573 = vmatpush3.msra.mxu1 %v2275_v28  ;;  %v2329_v27 = vpop.f32.mrf.mxu0 }
 0x1a5   : > { %1574 = vmatprep.subr.mxu1 %v861_v1 }
 0x1a6   : > { %1575 = vmatpush3.msra.mxu1 %v2271_v24  ;;  %v908_v44 = vpop.f32.mrf.mxu0 }
 0x1a7   : > { %1576 = vmatprep.subr.mxu1 %v856_v56  ;;  %v1055_v44 = vld [vmem:[#allocation3] sm:$0xff] }
 0x1a8   : > { %1577 = vmatpush3.msra.mxu1 %v2267_v20  ;;  %v2333_v40 = vpop.f32.mrf.mxu0 }
 0x1a9   : > { %1578 = vmatprep.subr.mxu1 %v851_v45 }
 0x1aa   : > { %1579 = vmatpush3.msra.mxu1 %v2263_v16  ;;  %v913_v36 = vpop.f32.mrf.mxu0 }
 0x1ab   : > { %1580 = vmatprep.subr.mxu1 %v846_v37  ;;  %v1094_v37 = vld [vmem:[%s1949_s15 + $0xf8] sm:$0xff] }
 0x1ac   : > { %1581 = vmatpush3.msra.mxu1 %v2258_v11  ;;  %v2337_v28 = vpop.f32.mrf.mxu0 }
 0x1ad   : > { %1582 = vmatprep.subr.mxu1 %v841_v29  ;;  %v1090_v29 = vld [vmem:[%s1949_s15 + $0xd8] sm:$0xff] }
 0x1ae   : > { %1583 = vmatpush3.msra.mxu1 %v2254_v7  ;;  %v918_v24 = vpop.f32.mrf.mxu0  ;;  %v1063_v7 = vld [vmem:[%s1949_s15] sm:$0xff] }
 0x1af   : > { %1584 = vmatprep.subr.mxu1 %v2311_v21  ;;  %v1086_v21 = vld [vmem:[%s1949_s15 + $0xb8] sm:$0xff] }
 0x1b0   : > { %1585 = vmatpush3.msra.mxu1 %v2250_v3  ;;  %v921_v20 = vpop.f32.mrf.mxu0  ;;  %v1068_v3 = vld [vmem:[%s1949_s15 + $0x28] sm:$0xff] }
 0x1b1   : > { %1586 = vmatprep.subr.mxu1 %v2307_v13  ;;  %v1082_v13 = vld [vmem:[%s1949_s15 + $0x98] sm:$0xff] }
 0x1b2   : > { %1587 = vmatpush3.msra.mxu1 %v2246_v63  ;;  %v923_v16 = vpop.f32.mrf.mxu0 }
 0x1b3   : > { %1588 = vmatprep.subr.mxu1 %v2303_v5  ;;  %v1078_v5 = vld [vmem:[%s1949_s15 + $0x78] sm:$0xff] }
 0x1b4   : > { %1589 = vmatpush3.msra.mxu1 %v2242_v59  ;;  %v926_v11 = vpop.f32.mrf.mxu0  ;;  %v1067_v59 = vld [vmem:[%s1949_s15 + $0x20] sm:$0xff] }
 0x1b5   : > { %1590 = vmatprep.subr.mxu1 %v2299_v61  ;;  %v1074_v61 = vld [vmem:[%s1949_s15 + $0x58] sm:$0xff] }
 0x1b6   : > { %1591 = vmatpush3.msra.mxu1 %v2238_v55  ;;  %v928_v32 = vpop.f32.mrf.mxu0  ;;  %v1072_v55 = vld [vmem:[%s1949_s15 + $0x48] sm:$0xff] }
 0x1b7   : > { %1592 = vmatprep.subr.mxu1 %v2295_v53  ;;  %v1088_v53 = vld [vmem:[%s1949_s15 + $0xc8] sm:$0xff] }
 0x1b8   : > { %1593 = vmatpush3.msra.mxu1 %v2234_v52  ;;  %v931_v63 = vpop.f32.mrf.mxu0  ;;  %v1071_v52 = vld [vmem:[%s1949_s15 + $0x40] sm:$0xff] }
 0x1b9   : > { %1618 = vmatprep.subr.mxu1 %v2319_v50  ;;  %1160 = vmatmul.mubr.f32.vlgmr.msra.gmra.mxu1 %v1063_v7 }
 0x1ba   : > { %1619 = vmatpush3.msra.mxu1 %v2265_v19  ;;  %1164 = vmatprep.mubr.f32.mxu1 %v1068_v3  ;;  %v933_v48 = vpop.f32.mrf.mxu0  ;;  %v1076_v19 = vld [vmem:[%s1949_s15 + $0x68] sm:$0xff] }
 0x1bb   : > { %1620 = vmatprep.subr.mxu1 %v2317_v42  ;;  %v1093_v42 = vld [vmem:[%s1949_s15 + $0xf0] sm:$0xff] }
 0x1bc   : > { %1621 = vmatpush3.msra.mxu1 %v2260_v14  ;;  %v1075_v14 = vld [vmem:[%s1949_s15 + $0x60] sm:$0xff] }
 0x1bd   : > { %1622 = vmatprep.subr.mxu1 %v2315_v34  ;;  %1165 = vmatmul.mubr.f32.gmra.mxu1 %v1067_v59  ;;  %v1089_v34 = vld [vmem:[%s1949_s15 + $0xd0] sm:$0xff] }
 0x1be   : > { %1623 = vmatpush3.msra.mxu1 %v2256_v10  ;;  %1169 = vmatprep.mubr.f32.mxu1 %v1072_v55  ;;  %v1080_v10 = vld [vmem:[%s1949_s15 + $0x88] sm:$0xff]  ;;  %v1057_v55 = vld [vmem:[#allocation3 + $0x10] sm:$0xff] }
 0x1bf   : > { %1624 = vmatprep.subr.mxu1 %v2313_v26  ;;  %v1085_v26 = vld [vmem:[%s1949_s15 + $0xb0] sm:$0xff] }
 0x1c0   : > { %1625 = vmatpush3.msra.mxu1 %v2252_v6  ;;  %v1079_v6 = vld [vmem:[%s1949_s15 + $0x80] sm:$0xff] }
 0x1c1   : > { %1626 = vmatprep.subr.mxu1 %v2309_v18  ;;  %1170 = vmatmul.mubr.f32.gmra.mxu1 %v1071_v52  ;;  %v1081_v18 = vld [vmem:[%s1949_s15 + $0x90] sm:$0xff] }
 0x1c2   : > { %1627 = vmatpush3.msra.mxu1 %v2248_v2  ;;  %1174 = vmatprep.mubr.f32.mxu1 %v1076_v19  ;;  %v1084_v2 = vld [vmem:[%s1949_s15 + $0xa8] sm:$0xff] }
 0x1c3   : > { %1628 = vmatprep.subr.mxu1 %v2305_v12  ;;  %v1077_v12 = vld [vmem:[%s1949_s15 + $0x70] sm:$0xff] }
 0x1c4   : > { %1629 = vmatpush3.msra.mxu1 %v2244_v62  ;;  %v1083_v62 = vld [vmem:[%s1949_s15 + $0xa0] sm:$0xff] }
 0x1c5   : > { %1630 = vmatprep.subr.mxu1 %v2301_v4  ;;  %1175 = vmatmul.mubr.f32.gmra.mxu1 %v1075_v14  ;;  %v1073_v4 = vld [vmem:[%s1949_s15 + $0x50] sm:$0xff] }
 0x1c6   : > { %1631 = vmatpush3.msra.mxu1 %v2240_v58  ;;  %1179 = vmatprep.mubr.f32.mxu1 %v1080_v10  ;;  %v1087_v58 = vld [vmem:[%s1949_s15 + $0xc0] sm:$0xff] }
 0x1c7   : > { %1632 = vmatprep.subr.mxu1 %v2297_v60  ;;  %v1070_v60 = vld [vmem:[%s1949_s15 + $0x38] sm:$0xff] }
 0x1c8   : > { %1633 = vmatpush3.msra.mxu1 %v2236_v54  ;;  %v1092_v54 = vld [vmem:[%s1949_s15 + $0xe8] sm:$0xff] }
 0x1c9   : > { %1634 = vmatprep.subr.mxu1 %v2293_v51  ;;  %1180 = vmatmul.mubr.f32.gmra.mxu1 %v1079_v6  ;;  %v2490_v51 = vld [vmem:[#allocation6_spill] sm:$0xff] }
 0x1ca   : > { %1635 = vmatpush3.msra.mxu1 %v931_v63  ;;  %1184 = vmatprep.mubr.f32.mxu1 %v1084_v2 }
 0x1cb   : > { %1636 = vmatprep.subr.mxu1 %v2291_v47  ;;  %v1066_v47 = vld [vmem:[%s1949_s15 + $0x18] sm:$0xff] }
 0x1cc   : > { %1637 = vmatpush3.msra.mxu1 %v926_v11  ;;  %v1056_v11 = vld [vmem:[#allocation3 + $0x8] sm:$0xff] }
 0x1cd   : > { %1638 = vmatprep.subr.mxu1 %v2289_v43  ;;  %1185 = vmatmul.mubr.f32.gmra.mxu1 %v1083_v62  ;;  %v1091_v43 = vld [vmem:[%s1949_s15 + $0xe0] sm:$0xff]  ;;  %v1058_v62 = vld [vmem:[#allocation3 + $0x18] sm:$0xff] }
 0x1ce   : > { %1639 = vmatpush3.msra.mxu1 %v921_v20  ;;  %1189 = vmatprep.mubr.f32.mxu1 %v1088_v53 }
 0x1cf   : > { %1640 = vmatprep.subr.mxu1 %v2285_v39  ;;  %v2489_v39 = vld [vmem:[#allocation7_spill] sm:$0xff] }
 0x1d0   : > { %1641 = vmatpush3.msra.mxu1 %v2337_v28 }
 0x1d1   : > { %1642 = vmatprep.subr.mxu1 %v2281_v35  ;;  %1190 = vmatmul.mubr.f32.gmra.mxu1 %v1087_v58  ;;  %v1065_v35 = vld [vmem:[%s1949_s15 + $0x10] sm:$0xff] }
 0x1d2   : > { %1643 = vmatpush3.msra.mxu1 %v2333_v40  ;;  %1194 = vmatprep.mubr.f32.mxu1 %v1092_v54 }
 0x1d3   : > { %1644 = vmatprep.subr.mxu1 %v2277_v31  ;;  %v1069_v31 = vld [vmem:[%s1949_s15 + $0x30] sm:$0xff] }
 0x1d4   : > { %1645 = vmatpush3.msra.mxu1 %v2329_v27 }
 0x1d5   : > { %1646 = vmatprep.subr.mxu1 %v2489_v39  ;;  %1195 = vmatmul.mubr.f32.gmra.mxu1 %v1091_v43 }
 0x1d6   : > { %1647 = vmatpush3.msra.mxu1 %v2325_v0  ;;  %1264 = vmatprep.mubr.f32.mxu1 %v1066_v47 }
 0x1d7   : > { %1648 = vmatprep.subr.mxu1 %v2490_v51 }
 0x1d8   : > { %1649 = vmatpush3.msra.mxu1 %v2321_v49 }
 0x1d9   : > { %1265 = vmatmul.mubr.f32.vlgmr.msra.gmra.mxu1 %v1065_v35  ;;  %v1059_v35 = vld [vmem:[#allocation3 + $0x20] sm:$0xff] }
 0x1da   : > { %1269 = vmatprep.mubr.f32.mxu1 %v1070_v60 }
 0x1dd   : > { %1270 = vmatmul.mubr.f32.gmra.mxu1 %v1069_v31 }
 0x1de   : > { %1274 = vmatprep.mubr.f32.mxu1 %v1074_v61 }
 0x1e1   : > { %1275 = vmatmul.mubr.f32.gmra.mxu1 %v1073_v4 }
 0x1e2   : > { %1279 = vmatprep.mubr.f32.mxu1 %v1078_v5 }
 0x1e5   : > { %1280 = vmatmul.mubr.f32.gmra.mxu1 %v1077_v12  ;;  %v1060_v12 = vld [vmem:[#allocation3 + $0x28] sm:$0xff] }
 0x1e6   : > { %1284 = vmatprep.mubr.f32.mxu1 %v1082_v13 }
 0x1e9   : > { %1285 = vmatmul.mubr.f32.gmra.mxu1 %v1081_v18 }
 0x1ea   : > { %1289 = vmatprep.mubr.f32.mxu1 %v1086_v21 }
 0x1ed   : > { %1290 = vmatmul.mubr.f32.gmra.mxu1 %v1085_v26 }
 0x1ee   : > { %1294 = vmatprep.mubr.f32.mxu1 %v1090_v29 }
 0x1f1   : > { %1295 = vmatmul.mubr.f32.gmra.mxu1 %v1089_v34 }
 0x1f2   : > { %1299 = vmatprep.mubr.f32.mxu1 %v1094_v37  ;;  %v1061_v37 = vld [vmem:[#allocation3 + $0x30] sm:$0xff] }
 0x1f5   : > { %1300 = vmatmul.mubr.f32.gmra.mxu1 %v1093_v42 }
 0x279   : > { %v1594_v45 = vpop.f32.mrf.mxu1 }
 0x27b   : > { %v1595_v50 = vpop.f32.mrf.mxu1 }
 0x27c   : > { %v1596_v23 = vadd.f32 %v1595_v50, %v1594_v45 }
 0x27d   : > { %v1597_v56 = vpop.f32.mrf.mxu1 }
 0x27f   : > { %v1598_v1 = vpop.f32.mrf.mxu1 }
 0x280   : > { %v1599_v24 = vadd.f32 %v1598_v1, %v1597_v56 }
 0x281   : > { %v1600_v8 = vpop.f32.mrf.mxu1 }
 0x283   : > { %v1601_v9 = vpop.f32.mrf.mxu1 }
 0x284   : > { %v1602_v63 = vadd.f32 %v1601_v9, %v1600_v8  ;;  %v1062_v9 = vld [vmem:[#allocation3 + $0x38] sm:$0xff] }
 0x285   : > { %v1603_v15 = vpop.f32.mrf.mxu1 }
 0x287   : > { %v1604_v17 = vpop.f32.mrf.mxu1 }
 0x288   : > { %v1605_v10 = vadd.f32 %v1604_v17, %v1603_v15 }
 0x289   : > { %v1606_v22 = vpop.f32.mrf.mxu1 }
 0x28b   : > { %v1607_v25 = vpop.f32.mrf.mxu1 }
 0x28c   : > { %v1608_v43 = vadd.f32 %v1607_v25, %v1606_v22 }
 0x28d   : > { %v1609_v30 = vpop.f32.mrf.mxu1 }
 0x28f   : > { %v1610_v33 = vpop.f32.mrf.mxu1 }
 0x290   : > { %v1611_v61 = vadd.f32 %v1610_v33, %v1609_v30 }
 0x291   : > { %v1612_v38 = vpop.f32.mrf.mxu1 }
 0x293   : > { %v1613_v41 = vpop.f32.mrf.mxu1 }
 0x294   : > { %v1614_v26 = vadd.f32 %v1613_v41, %v1612_v38 }
 0x295   : > { %v1615_v46 = vpop.f32.mrf.mxu1 }
 0x297   : > { %v1616_v49 = vpop.f32.mrf.mxu1 }
 0x298   : > { %v1617_v56 = vadd.f32 %v1616_v49, %v1615_v46 }
 0x299   : > { %v1650_v57 = vpop.f32.mrf.mxu1 }
 0x29b   : > { %v1651_v0 = vpop.f32.mrf.mxu1 }
 0x29c   : > { %v1652_v27 = vadd.f32 %v1651_v0, %v1650_v57 }
 0x29d   : > { %v1653_v40 = vpop.f32.mrf.mxu1 }
 0x29e   : > { %v1267_v36 = vadd.f32 %v1652_v27, %v1596_v23 }
 0x29f   : > { %v1654_v28 = vpop.f32.mrf.mxu1 }
 0x2a0   : > { %v1305_v20 = vadd.f32 %v1267_v36, %v1055_v44  ;;  %v1655_v16 = vadd.f32 %v1654_v28, %v1653_v40 }
 0x2a1   : > { %v1656_v7 = vpop.f32.mrf.mxu1 }
 0x2a2   : > { %1313 = vst [vmem:[#allocation3] sm:$0xff] %v1305_v20  ;;  %v1272_v32 = vadd.f32 %v1655_v16, %v1599_v24 }
 0x2a3   : > { %v1657_v3 = vpop.f32.mrf.mxu1 }
 0x2a4   : > { %v1306_v59 = vadd.f32 %v1272_v32, %v1056_v11  ;;  %v1658_v48 = vadd.f32 %v1657_v3, %v1656_v7 }
 0x2a5   : > { %v1659_v52 = vpop.f32.mrf.mxu1 }
 0x2a6   : > { %1314 = vst [vmem:[#allocation3 + $0x8] sm:$0xff] %v1306_v59  ;;  %v1277_v19 = vadd.f32 %v1658_v48, %v1602_v63 }
 0x2a7   : > { %v1660_v14 = vpop.f32.mrf.mxu1 }
 0x2a8   : > { %v1307_v6 = vadd.f32 %v1277_v19, %v1057_v55  ;;  %v1661_v2 = vadd.f32 %v1660_v14, %v1659_v52 }
 0x2a9   : > { %v1662_v53 = vpop.f32.mrf.mxu1 }
 0x2aa   : > { %1315 = vst [vmem:[#allocation3 + $0x10] sm:$0xff] %v1307_v6  ;;  %v1282_v58 = vadd.f32 %v1661_v2, %v1605_v10 }
 0x2ab   : > { %v1663_v54 = vpop.f32.mrf.mxu1 }
 0x2ac   : > { %v1308_v47 = vadd.f32 %v1282_v58, %v1058_v62  ;;  %v1664_v39 = vadd.f32 %v1663_v54, %v1662_v53 }
 0x2ad   : > { %v1665_v51 = vpop.f32.mrf.mxu1 }
 0x2ae   : > { %1316 = vst [vmem:[#allocation3 + $0x18] sm:$0xff] %v1308_v47  ;;  %v1287_v60 = vadd.f32 %v1664_v39, %v1608_v43 }
 0x2af   : > { %v1666_v31 = vpop.f32.mrf.mxu1 }
 0x2b0   : > { %v1309_v4 = vadd.f32 %v1287_v60, %v1059_v35  ;;  %v1667_v5 = vadd.f32 %v1666_v31, %v1665_v51 }
 0x2b1   : > { %v1668_v13 = vpop.f32.mrf.mxu1 }
 0x2b2   : > { %1317 = vst [vmem:[#allocation3 + $0x20] sm:$0xff] %v1309_v4  ;;  %v1292_v18 = vadd.f32 %v1667_v5, %v1611_v61 }
 0x2b3   : > { %v1669_v21 = vpop.f32.mrf.mxu1 }
 0x2b4   : > { %v1310_v29 = vadd.f32 %v1292_v18, %v1060_v12  ;;  %v1670_v34 = vadd.f32 %v1669_v21, %v1668_v13 }
 0x2b5   : > { %v1671_v42 = vpop.f32.mrf.mxu1 }
 0x2b6   : > { %1318 = vst [vmem:[#allocation3 + $0x28] sm:$0xff] %v1310_v29  ;;  %v1297_v45 = vadd.f32 %v1670_v34, %v1614_v26 }
 0x2b7   : > { %v1672_v50 = vpop.f32.mrf.mxu1 }
 0x2b8   : > { %v1311_v1 = vadd.f32 %v1297_v45, %v1061_v37  ;;  %v1673_v8 = vadd.f32 %v1672_v50, %v1671_v42 }
 0x2ba   : > { %1319 = vst [vmem:[#allocation3 + $0x30] sm:$0xff] %v1311_v1  ;;  %v1302_v15 = vadd.f32 %v1673_v8, %v1617_v56  ;;  %1324 = sbr.rel (%p1555_p10) target bundleno = 846 (0x34e), region = 71 }
 0x2bc   : > { %v1312_v17 = vadd.f32 %v1302_v15, %v1062_v9 }
 0x2be   : > { %1320 = vst [vmem:[#allocation3 + $0x38] sm:$0xff] %v1312_v17 }
 0x2bf   : > { %v1335_v22 = vld [vmem:[%s2484_s3 + $0x10] sm:$0xff]  ;;  %v1333_v25 = vld [vmem:[%s2484_s3] sm:$0xff]  ;;  %v1802_v30 = vmov 0   ;;  %v1336_v33 = vld [vmem:[%s2484_s3 + $0x18] sm:$0xff] }
 0x2c0   : > { %1747 = vset.pattern.permute.xlu1 %v1802_v30  ;;  %1746 = vset.pattern.permute.xlu0 %v1802_v30  ;;  %v1334_v38 = vld [vmem:[%s2484_s3 + $0x8] sm:$0xff]  ;;  %v1337_v46 = vld [vmem:[%s2484_s3 + $0x20] sm:$0xff]  ;;  %v1340_v49 = vld [vmem:[%s2484_s3 + $0x38] sm:$0xff] }
 0x2c1   : > { %1353 = vperm.xlu1 %1747, %v1335_v22   ;;  %1343 = vperm.xlu0 %1746, %v1333_v25   ;;  %v1338_v41 = vld [vmem:[%s2484_s3 + $0x28] sm:$0xff]  ;;  %v1339_v57 = vld [vmem:[%s2484_s3 + $0x30] sm:$0xff]  ;;  %v1325_v23 = vld [vmem:[#allocation3] sm:$0xff] }
 0x2c2   : > { %v1327_v0 = vld [vmem:[#allocation3 + $0x10] sm:$0xff]  ;;  %v1389_v40 = vld [vmem:[%s2485_s4] sm:$0xff]  ;;  %v1328_v20 = vld [vmem:[#allocation3 + $0x18] sm:$0xff] }
 0x2c3   : > { %v1391_v27 = vld [vmem:[%s2485_s4 + $0x10] sm:$0xff]  ;;  %v1326_v16 = vld [vmem:[#allocation3 + $0x8] sm:$0xff]  ;;  %v1392_v32 = vld [vmem:[%s2485_s4 + $0x18] sm:$0xff] }
 0x2c4   : > { %v1390_v63 = vld [vmem:[%s2485_s4 + $0x8] sm:$0xff]  ;;  %v1329_v19 = vld [vmem:[#allocation3 + $0x20] sm:$0xff]  ;;  %v1331_v47 = vld [vmem:[#allocation3 + $0x30] sm:$0xff] }
 0x2c5   : > { %1358 = vperm.xlu1 %1747, %v1336_v33   ;;  %1348 = vperm.xlu0 %1746, %v1334_v38   ;;  %v1330_v52 = vld [vmem:[#allocation3 + $0x28] sm:$0xff]  ;;  %v1393_v62 = vld [vmem:[%s2485_s4 + $0x20] sm:$0xff]  ;;  %v1332_v43 = vld [vmem:[#allocation3 + $0x38] sm:$0xff] }
 0x2c6   : > { %v1394_v6 = vld [vmem:[%s2485_s4 + $0x28] sm:$0xff]  ;;  %v1396_v51 = vld [vmem:[%s2485_s4 + $0x38] sm:$0xff]  ;;  %v1395_v31 = vld [vmem:[%s2485_s4 + $0x30] sm:$0xff] }
 0x2c9   : > { %1368 = vperm.xlu1 %1747, %v1338_v41   ;;  %1363 = vperm.xlu0 %1746, %v1337_v46  }
 0x2cd   : > { %1378 = vperm.xlu1 %1747, %v1340_v49   ;;  %1373 = vperm.xlu0 %1746, %v1339_v57  }
 0x33c   : > { %v1354_v44 = vpop.permute.xlu1 %1353  ;;  %v1344_v36 = vpop.permute.xlu0 %1343 }
 0x33d   : > { %v1383_v28 = vmul.f32 %v1354_v44, %v1327_v0  ;;  %v1381_v24 = vmul.f32 %v1344_v36, %v1325_v23 }
 0x33f   : > { %v1399_v11 = vadd.f32 %v1391_v27, %v1383_v28  ;;  %v1397_v7 = vadd.f32 %v1389_v40, %v1381_v24 }
 0x340   : > { %v1359_v3 = vpop.permute.xlu1 %1358  ;;  %v1349_v59 = vpop.permute.xlu0 %1348 }
 0x341   : > { %1407 = vst [vmem:[#allocation3 + $0x10] sm:$0xff] %v1399_v11  ;;  %1405 = vst [vmem:[#allocation3] sm:$0xff] %v1397_v7  ;;  %v1384_v48 = vmul.f32 %v1359_v3, %v1328_v20  ;;  %v1382_v55 = vmul.f32 %v1349_v59, %v1326_v16 }
 0x343   : > { %v1400_v14 = vadd.f32 %v1392_v32, %v1384_v48  ;;  %v1398_v10 = vadd.f32 %v1390_v63, %v1382_v55 }
 0x344   : > { %v1369_v2 = vpop.permute.xlu1 %1368  ;;  %v1364_v53 = vpop.permute.xlu0 %1363 }
 0x345   : > { %1408 = vst [vmem:[#allocation3 + $0x18] sm:$0xff] %v1400_v14  ;;  %1406 = vst [vmem:[#allocation3 + $0x8] sm:$0xff] %v1398_v10  ;;  %v1386_v58 = vmul.f32 %v1369_v2, %v1330_v52  ;;  %v1385_v54 = vmul.f32 %v1364_v53, %v1329_v19 }
 0x347   : > { %v1402_v39 = vadd.f32 %v1394_v6, %v1386_v58  ;;  %v1401_v35 = vadd.f32 %v1393_v62, %v1385_v54 }
 0x348   : > { %v1379_v60 = vpop.permute.xlu1 %1378  ;;  %v1374_v61 = vpop.permute.xlu0 %1373 }
 0x349   : > { %1410 = vst [vmem:[#allocation3 + $0x28] sm:$0xff] %v1402_v39  ;;  %1409 = vst [vmem:[#allocation3 + $0x20] sm:$0xff] %v1401_v35  ;;  %v1388_v4 = vmul.f32 %v1379_v60, %v1332_v43  ;;  %v1387_v5 = vmul.f32 %v1374_v61, %v1331_v47 }
 0x34b   : > { %v1404_v12 = vadd.f32 %v1396_v51, %v1388_v4  ;;  %v1403_v13 = vadd.f32 %v1395_v31, %v1387_v5 }
 0x34d   : > { %1412 = vst [vmem:[#allocation3 + $0x38] sm:$0xff] %v1404_v12  ;;  %1411 = vst [vmem:[#allocation3 + $0x30] sm:$0xff] %v1403_v13 }
 0x34e PF: > { %p1714_p11 = scmp.eq.s32.totalorder %s1852_s21, 1  ;;  %s1803_s27 = smov [#allocation3]  }
 0x34f   : > { %s1419_s28 = sshll.u32 %s1803_s27, 4  ;;  %s1420_s28 = int_to_ptr.vmem [resolvable:$true] %s1419_s28 }
 0x350   : > { %s1748_s29 = scalar_lea.vmem %s1420_s28, 1024  ;;  %p1755_p1 = scmp.lt.s32.totalorder %s1420_s28, %s1420_s28 }
 0x351   : > { %p1749_p12 = scmp.ne.s32.totalorder %s1420_s28, %s1748_s29  ;;  %p1756_p2 = scmp.lt.s32.totalorder %s1748_s29, %s1748_s29 }
 0x353   : > { %p1750_p13 = pnand %p1749_p12, %p1714_p11  ;;  %p1757_p3 = por %p1756_p2, %p1755_p1 }
 0x355   : > { %p1751_p0 = pneg %p1750_p13 }
 0x357   : > { %p1758_p4 = pnand %p1757_p3, %p1751_p0 }
 0x359   : > { %1761 = shalt.err (!%p1758_p4)
}
 0x35a   : > { %s1804_s30 = smov 128   ;;  %s1805_s6 = smov 8  }
 0x35b   : > { %1711 = dma.vmem_to_hbm [thread:$0]  (%p1714_p11), %s1420_s28, 1024, %s2486_s5, [#allocation4], %s1804_s30, %s1804_s30, %s1805_s6  }
 0x35c   : > { %1785 = dma.done.wait (%p1714_p11), [#allocation4], 1024  }
 0x35d   : > { %1787 = vsyncadd (%p1714_p11), [#allocation4], 4294966272 }
 0x35e PF: > { %p13_p5 = scmp.ge.s32.totalorder %s1855_s22, 4   ;;  %s2491_s18 = smov %s1794_s19 }
 0x35f   : > { %s2492_s19 = smov %s1864_s25  ;;  %s2493_s20 = smov %s1855_s22 }
 0x360   :  { %15 = sbr.rel (!%p13_p5) target bundleno = 2 (0x2), region = 106 }
 0x365   :  { %1435 = vsyncpa [#allocation4], 1 }
 0x366   :  { %1437 = vsyncpa [#allocation4 + $0x1], 1 }

</bundles_post_ra>
